<compile_context>
chip_gen: v7x
topology: tpu7x:2x2x1
jax: 0.10.0
libtpu: 0.0.40
codegen_flags: <defaults>
</compile_context>

<pallas_src>
import functools

import jax
import jax.numpy as jnp
from jax.experimental import pallas as pl
from jax.experimental.pallas import tpu as pltpu


def _attention_kernel(x_ref, wq_ref, wk_ref, wv_ref, wout_ref, bout_ref,
                      o_ref, k_sc, v_sc, oh_sc, *, heads, q_tile, n_valid):
    # x_ref:    (1, N_pad, D) f32  full (padded) token sequence of this batch element
    # wq_ref:   (D, D)  bf16  Q projection, softmax scale pre-folded
    # wk_ref:   (D, D)  bf16  K projection
    # wv_ref:   (D, D)  bf16  V projection
    # wout_ref: (D, D)  bf16  output projection
    # bout_ref: (1, D)  f32   output projection bias
    # o_ref:    (1, TQ, D)    output tile
    # k_sc/v_sc:(N_pad, D) bf16 VMEM scratch, persists across the query-tile axis
    # oh_sc:    (TQ, D) bf16  concatenated per-head attention outputs
    qi = pl.program_id(1)
    n_pad = k_sc.shape[0]
    dmodel = wq_ref.shape[0]
    d = dmodel // heads

    # ---- K/V projection: once per batch element (qi is innermost, "arbitrary") ----
    # Full-width (N, D) x (D, D) MXU matmuls stored directly into lane-dense scratch.
    @pl.when(qi == 0)
    def _():
        xf = x_ref[0].astype(jnp.bfloat16)                              # (N_pad, D)
        k_sc[...] = jnp.dot(xf, wk_ref[...],
                            preferred_element_type=jnp.float32).astype(jnp.bfloat16)
        v_sc[...] = jnp.dot(xf, wv_ref[...],
                            preferred_element_type=jnp.float32).astype(jnp.bfloat16)

    # Query tile sliced out of the resident sequence (no duplicate x operand).
    start = pl.multiple_of(qi * q_tile, q_tile)
    xq = x_ref[0, pl.ds(start, q_tile), :].astype(jnp.bfloat16)         # (TQ, D)

    # Full-width Q projection; softmax scale already folded into wq host-side.
    q_all = jnp.dot(xq, wq_ref[...],
                    preferred_element_type=jnp.float32).astype(jnp.bfloat16)

    for h in range(heads):
        lo, hi = h * d, (h + 1) * d
        q_h = q_all[:, lo:hi]                                           # (TQ, d)
        k_h = k_sc[:, lo:hi]                                            # (N_pad, d)
        v_h = v_sc[:, lo:hi]
        # Scores: contract head dim on both operands (no explicit transpose).
        dots = jnp.einsum('qd,kd->qk', q_h, k_h,
                          preferred_element_type=jnp.float32)           # (TQ, N_pad)
        if n_valid < n_pad:  # static: mask padded key columns before max/exp
            kid = jax.lax.broadcasted_iota(jnp.int32, dots.shape, 1)
            dots = jnp.where(kid < n_valid, dots, -1e30)
        # Numerically-stable, UN-normalized softmax in f32.
        m = jnp.max(dots, axis=-1, keepdims=True)
        e = jnp.exp(dots - m)
        denom = jnp.sum(e, axis=-1, keepdims=True)                      # (TQ, 1)
        # P @ V first (bf16 MXU, f32 acc); normalize the small (TQ, d) result with an
        # approx reciprocal (EUP slot, off the (TQ, N) tile).
        pv = jnp.dot(e.astype(jnp.bfloat16), v_h,
                     preferred_element_type=jnp.float32)                # (TQ, d)
        out_h = pv * pl.reciprocal(denom, approx=True)
        # Head merge: cheap bf16 VMEM store, matches the 'b h n d -> b n (h d)' order.
        oh_sc[:, lo:hi] = out_h.astype(jnp.bfloat16)

    # Output projection as ONE full-width matmul; result consumed immediately by the
    # store (no persistent f32 register accumulator).
    y = jnp.dot(oh_sc[...], wout_ref[...], preferred_element_type=jnp.float32)
    o_ref[0] = (y + bout_ref[...]).astype(o_ref.dtype)


def attention_forward(x, wqkv_t, wout_t, bout, *, heads, q_tile=None):
    """x: (B, N, D); wqkv_t: (D, 3D); wout_t: (D, D); bout: (D,)."""
    B, N, D = x.shape
    assert D % heads == 0, "embedding dim must be divisible by heads"
    scale = float(D) ** -0.5          # PyTorch module uses dim ** (-0.5) (full dim)

    # Query tile: full N for ViT-scale sequences (grid (B, 1), no padding, max MXU M
    # dim, single K/V projection per batch element); 128-row tiles otherwise.
    if q_tile is None:
        q_tile = N if N <= 512 else 128

    # Pad N so it tiles cleanly; padded KEY columns are masked in-kernel, padded
    # QUERY rows are sliced off below.
    n_pad = -(-N // q_tile) * q_tile
    if q_tile != n_pad:
        assert q_tile % 8 == 0, "q_tile must be a multiple of 8 when smaller than N"
    x_p = x if n_pad == N else jnp.pad(x, ((0, 0), (0, n_pad - N), (0, 0)))
    n_q = n_pad // q_tile

    # Host-side weight prep (zero in-kernel cost):
    #  * fused QKV split into three full-width (D, D) matrices -> every projection
    #    matmul has D output lanes (full MXU width), not head_dim,
    #  * softmax scale constant-folded into Wq,
    #  * bf16 weights (MXU rate on v6e/v7x, half the weight DMA).
    wq = (wqkv_t[:, 0 * D:1 * D] * scale).astype(jnp.bfloat16)
    wk = wqkv_t[:, 1 * D:2 * D].astype(jnp.bfloat16)
    wv = wqkv_t[:, 2 * D:3 * D].astype(jnp.bfloat16)
    wo = wout_t.astype(jnp.bfloat16)
    bout2d = bout.reshape(1, D).astype(jnp.float32)

    kernel = functools.partial(_attention_kernel, heads=heads, q_tile=q_tile,
                               n_valid=N)

    out = pl.pallas_call(
        kernel,
        out_shape=jax.ShapeDtypeStruct((B, n_pad, D), x.dtype),
        grid_spec=pltpu.PrefetchScalarGridSpec(
            num_scalar_prefetch=0,
            grid=(B, n_q),
            in_specs=[
                pl.BlockSpec((1, n_pad, D), lambda b, qi: (b, 0, 0)),  # full sequence
                pl.BlockSpec((D, D), lambda b, qi: (0, 0)),            # Wq (scaled)
                pl.BlockSpec((D, D), lambda b, qi: (0, 0)),            # Wk
                pl.BlockSpec((D, D), lambda b, qi: (0, 0)),            # Wv
                pl.BlockSpec((D, D), lambda b, qi: (0, 0)),            # Wout
                pl.BlockSpec((1, D), lambda b, qi: (0, 0)),            # bias
            ],
            out_specs=pl.BlockSpec((1, q_tile, D), lambda b, qi: (b, qi, 0)),
            scratch_shapes=[
                pltpu.VMEM((n_pad, D), jnp.bfloat16),    # K scratch (per batch elem)
                pltpu.VMEM((n_pad, D), jnp.bfloat16),    # V scratch
                pltpu.VMEM((q_tile, D), jnp.bfloat16),   # concatenated head outputs
            ],
        ),
        compiler_params=pltpu.CompilerParams(
            dimension_semantics=("parallel", "arbitrary"),
            # Headroom under the 64 MiB v7x VMEM; v5e/v6e (128 MiB) could go higher.
            vmem_limit_bytes=48 * 1024 * 1024,
        ),
    )(x_p, wq, wk, wv, wo, bout2d)

    return out if n_pad == N else out[:, :N, :]


def attention_reference(x, wqkv_t, wout_t, bout, *, heads):
    """Pure-JAX f32 reference matching the PyTorch module semantics (mask=None)."""
    B, N, D = x.shape
    d = D // heads
    scale = float(D) ** -0.5
    qkv = x @ wqkv_t                                                   # (B, N, 3D)
    qkv = qkv.reshape(B, N, 3, heads, d)                               # (qkv h d) split
    qkv = jnp.transpose(qkv, (2, 0, 3, 1, 4))                          # (3, B, H, N, d)
    q, k, v = qkv[0], qkv[1], qkv[2]
    dots = jnp.einsum('bhid,bhjd->bhij', q, k) * scale
    attn = jax.nn.softmax(dots, axis=-1)
    out = jnp.einsum('bhij,bhjd->bhid', attn, v)                       # (B, H, N, d)
    out = jnp.transpose(out, (0, 2, 1, 3)).reshape(B, N, D)            # b n (h d)
    return out @ wout_t + bout


if __name__ == "__main__":
    B, N, DIM, HEADS = 2, 16, 32, 8

    key = jax.random.PRNGKey(0)
    kx, kq, kw, kb = jax.random.split(key, 4)

    x = jax.random.normal(kx, (B, N, DIM), dtype=jnp.float32)
    # Shapes follow nn.Linear(dim, 3*dim, bias=False) and nn.Linear(dim, dim),
    # stored pre-transposed so y = x @ W matches y = x @ W_pt.T.
    wqkv_t = jax.random.normal(kq, (DIM, 3 * DIM), dtype=jnp.float32) * 0.1
    wout_t = jax.random.normal(kw, (DIM, DIM), dtype=jnp.float32) * 0.1
    bout = jax.random.normal(kb, (DIM,), dtype=jnp.float32) * 0.1

    y_ref = attention_reference(x, wqkv_t, wout_t, bout, heads=HEADS)

    # 1) q_tile=8 -> two query tiles per batch element (exercises K/V scratch reuse).
    y = attention_forward(x, wqkv_t, wout_t, bout, heads=HEADS, q_tile=8)
    y = jax.block_until_ready(y)
    err = float(jnp.max(jnp.abs(y - y_ref)))
    assert jnp.allclose(y, y_ref, atol=3e-2, rtol=3e-2), f"mismatch (tiled), max err {err}"

    # 2) default full-N tile -> grid (B, 1).
    y2 = attention_forward(x, wqkv_t, wout_t, bout, heads=HEADS)
    y2 = jax.block_until_ready(y2)
    err2 = float(jnp.max(jnp.abs(y2 - y_ref)))
    assert jnp.allclose(y2, y_ref, atol=3e-2, rtol=3e-2), f"mismatch (full-N), max err {err2}"

    # 3) ragged sequence (N=12 not a multiple of the 8-row tile) -> padded keys masked.
    x3 = x[:, :12, :]
    y3 = attention_forward(x3, wqkv_t, wout_t, bout, heads=HEADS, q_tile=8)
    y3 = jax.block_until_ready(y3)
    y3_ref = attention_reference(x3, wqkv_t, wout_t, bout, heads=HEADS)
    err3 = float(jnp.max(jnp.abs(y3 - y3_ref)))
    assert jnp.allclose(y3, y3_ref, atol=3e-2, rtol=3e-2), f"mismatch (padded), max err {err3}"

    print("KERNEL_OK")
</pallas_src>

<mosaic_0001>
module attributes {stable_mosaic.version = 11 : i64} {
  func.func @_attention_kernel(%arg0: i32, %arg1: i32, %arg2: memref<1x16x32xf32, #tpu.memory_space<vmem>>, %arg3: memref<32x32xbf16, #tpu.memory_space<vmem>>, %arg4: memref<32x32xbf16, #tpu.memory_space<vmem>>, %arg5: memref<32x32xbf16, #tpu.memory_space<vmem>>, %arg6: memref<32x32xbf16, #tpu.memory_space<vmem>>, %arg7: memref<1x32xf32, #tpu.memory_space<vmem>>, %arg8: memref<1x8x32xf32, #tpu.memory_space<vmem>>, %arg9: memref<16x32xbf16, #tpu.memory_space<vmem>>, %arg10: memref<16x32xbf16, #tpu.memory_space<vmem>>, %arg11: memref<8x32xbf16, #tpu.memory_space<vmem>>) attributes {dimension_semantics = [#tpu.dimension_semantics<parallel>, #tpu.dimension_semantics<arbitrary>], iteration_bounds = array<i64: 2, 2>, scalar_prefetch = 0 : i64, scratch_operands = 3 : i64, tpu.core_type = #tpu.core_type<tc>, window_params = [{transform_indices = @transform_0, window_bounds = array<i64: 1, 16, 32>}, {pipeline_mode = #tpu.pipeline_mode<synchronous>, transform_indices = @transform_1, window_bounds = array<i64: 32, 32>}, {pipeline_mode = #tpu.pipeline_mode<synchronous>, transform_indices = @transform_2, window_bounds = array<i64: 32, 32>}, {pipeline_mode = #tpu.pipeline_mode<synchronous>, transform_indices = @transform_3, window_bounds = array<i64: 32, 32>}, {pipeline_mode = #tpu.pipeline_mode<synchronous>, transform_indices = @transform_4, window_bounds = array<i64: 32, 32>}, {pipeline_mode = #tpu.pipeline_mode<synchronous>, transform_indices = @transform_5, window_bounds = array<i64: 1, 32>}, {transform_indices = @transform_6, window_bounds = array<i64: 1, 8, 32>}]} {
    %c0_i32 = arith.constant 0 : i32
    %0 = arith.cmpi eq, %arg1, %c0_i32 : i32
    %1 = arith.extui %0 : i1 to i32
    %c0_i32_0 = arith.constant 0 : i32
    %2 = arith.cmpi ne, %1, %c0_i32_0 : i32
    scf.if %2 {
      %c0_87 = arith.constant 0 : index
      %c0_88 = arith.constant 0 : index
      %c0_89 = arith.constant 0 : index
      %165 = vector.load %arg2[%c0_87, %c0_88, %c0_89] : memref<1x16x32xf32, #tpu.memory_space<vmem>>, vector<1x16x32xf32>
      %166 = vector.shape_cast %165 : vector<1x16x32xf32> to vector<16x32xf32>
      %167 = arith.truncf %166 : vector<16x32xf32> to vector<16x32xbf16>
      %c0_90 = arith.constant 0 : index
      %c0_91 = arith.constant 0 : index
      %168 = vector.load %arg4[%c0_90, %c0_91] : memref<32x32xbf16, #tpu.memory_space<vmem>>, vector<32x32xbf16>
      %cst_92 = arith.constant dense<0.000000e+00> : vector<16x32xf32>
      %169 = tpu.matmul %167, %168, %cst_92 {dimension_numbers = #tpu.dot_dimension_numbers<[1], [0], [0], [1], [0, 0, 1, 1], [], []>} : vector<16x32xbf16>, vector<32x32xbf16>, vector<16x32xf32> -> vector<16x32xf32>
      %170 = arith.truncf %169 : vector<16x32xf32> to vector<16x32xbf16>
      %c0_93 = arith.constant 0 : index
      %c0_94 = arith.constant 0 : index
      %171 = vector.load %arg9[%c0_93, %c0_94] : memref<16x32xbf16, #tpu.memory_space<vmem>>, vector<16x32xbf16>
      tpu.vector_store %arg9[%c0_93, %c0_94], %170 {strides = array<i32>} : memref<16x32xbf16, #tpu.memory_space<vmem>>, vector<16x32xbf16>,
      %c0_95 = arith.constant 0 : index
      %c0_96 = arith.constant 0 : index
      %172 = vector.load %arg5[%c0_95, %c0_96] : memref<32x32xbf16, #tpu.memory_space<vmem>>, vector<32x32xbf16>
      %cst_97 = arith.constant dense<0.000000e+00> : vector<16x32xf32>
      %173 = tpu.matmul %167, %172, %cst_97 {dimension_numbers = #tpu.dot_dimension_numbers<[1], [0], [0], [1], [0, 0, 1, 1], [], []>} : vector<16x32xbf16>, vector<32x32xbf16>, vector<16x32xf32> -> vector<16x32xf32>
      %174 = arith.truncf %173 : vector<16x32xf32> to vector<16x32xbf16>
      %c0_98 = arith.constant 0 : index
      %c0_99 = arith.constant 0 : index
      %175 = vector.load %arg10[%c0_98, %c0_99] : memref<16x32xbf16, #tpu.memory_space<vmem>>, vector<16x32xbf16>
      tpu.vector_store %arg10[%c0_98, %c0_99], %174 {strides = array<i32>} : memref<16x32xbf16, #tpu.memory_space<vmem>>, vector<16x32xbf16>,
    } else {
    }
    %c8_i32 = arith.constant 8 : i32
    %3 = arith.muli %arg1, %c8_i32 : i32
    %4 = tpu.assume_multiple %3, 8 : i32
    %c0 = arith.constant 0 : index
    %5 = arith.index_cast %4 : i32 to index
    %c0_1 = arith.constant 0 : index
    %6 = vector.load %arg2[%c0, %5, %c0_1] : memref<1x16x32xf32, #tpu.memory_space<vmem>>, vector<1x8x32xf32>
    %7 = vector.shape_cast %6 : vector<1x8x32xf32> to vector<8x32xf32>
    %8 = arith.truncf %7 : vector<8x32xf32> to vector<8x32xbf16>
    %c0_2 = arith.constant 0 : index
    %c0_3 = arith.constant 0 : index
    %9 = vector.load %arg3[%c0_2, %c0_3] : memref<32x32xbf16, #tpu.memory_space<vmem>>, vector<32x32xbf16>
    %cst = arith.constant dense<0.000000e+00> : vector<8x32xf32>
    %10 = tpu.matmul %8, %9, %cst {dimension_numbers = #tpu.dot_dimension_numbers<[1], [0], [0], [1], [0, 0, 1, 1], [], []>} : vector<8x32xbf16>, vector<32x32xbf16>, vector<8x32xf32> -> vector<8x32xf32>
    %11 = arith.truncf %10 : vector<8x32xf32> to vector<8x32xbf16>
    %12 = vector.extract_strided_slice %11 {offsets = [0, 0], sizes = [8, 4], strides = [1, 1]} : vector<8x32xbf16> to vector<8x4xbf16>
    %c0_4 = arith.constant 0 : index
    %c0_5 = arith.constant 0 : index
    %13 = vector.load %arg9[%c0_4, %c0_5] : memref<16x32xbf16, #tpu.memory_space<vmem>>, vector<16x4xbf16>
    %c0_6 = arith.constant 0 : index
    %c0_7 = arith.constant 0 : index
    %14 = vector.load %arg10[%c0_6, %c0_7] : memref<16x32xbf16, #tpu.memory_space<vmem>>, vector<16x4xbf16>
    "tpu.trace_start"() <{level = 10 : i32, message = "qd,kd->qk"}> : () -> ()
    %cst_8 = arith.constant dense<0.000000e+00> : vector<8x16xf32>
    %15 = tpu.matmul %12, %13, %cst_8 {dimension_numbers = #tpu.dot_dimension_numbers<[1], [1], [0], [0], [0, 0, 1, 0], [], []>} : vector<8x4xbf16>, vector<16x4xbf16>, vector<8x16xf32> -> vector<8x16xf32>
    "tpu.trace_stop"() : () -> ()
    %cst_9 = arith.constant dense<0xFF800000> : vector<8xf32>
    %16 = vector.multi_reduction <maximumf>, %15, %cst_9 [1] : vector<8x16xf32> to vector<8xf32>
    %17 = vector.shape_cast %16 : vector<8xf32> to vector<8x1xf32>
    %18 = vector.broadcast %17 : vector<8x1xf32> to vector<8x16xf32>
    %19 = arith.subf %15, %18 : vector<8x16xf32>
    %20 = math.exp %19 : vector<8x16xf32>
    %cst_10 = arith.constant dense<0.000000e+00> : vector<8xf32>
    %21 = vector.multi_reduction <add>, %20, %cst_10 [1] : vector<8x16xf32> to vector<8xf32>
    %22 = vector.shape_cast %21 : vector<8xf32> to vector<8x1xf32>
    %23 = arith.truncf %20 : vector<8x16xf32> to vector<8x16xbf16>
    %cst_11 = arith.constant dense<0.000000e+00> : vector<8x4xf32>
    %24 = tpu.matmul %23, %14, %cst_11 {dimension_numbers = #tpu.dot_dimension_numbers<[1], [0], [0], [1], [0, 0, 1, 1], [], []>} : vector<8x16xbf16>, vector<16x4xbf16>, vector<8x4xf32> -> vector<8x4xf32>
    %25 = tpu.reciprocal %22 {approx = true} : vector<8x1xf32> -> vector<8x1xf32>
    %26 = vector.broadcast %25 : vector<8x1xf32> to vector<8x4xf32>
    %27 = arith.mulf %24, %26 : vector<8x4xf32>
    %28 = arith.truncf %27 : vector<8x4xf32> to vector<8x4xbf16>
    %c0_12 = arith.constant 0 : index
    %c0_13 = arith.constant 0 : index
    %29 = vector.load %arg11[%c0_12, %c0_13] : memref<8x32xbf16, #tpu.memory_space<vmem>>, vector<8x4xbf16>
    tpu.vector_store %arg11[%c0_12, %c0_13], %28 {strides = array<i32>} : memref<8x32xbf16, #tpu.memory_space<vmem>>, vector<8x4xbf16>,
    %30 = vector.extract_strided_slice %11 {offsets = [0, 4], sizes = [8, 4], strides = [1, 1]} : vector<8x32xbf16> to vector<8x4xbf16>
    %c0_14 = arith.constant 0 : index
    %c4 = arith.constant 4 : index
    %31 = vector.load %arg9[%c0_14, %c4] : memref<16x32xbf16, #tpu.memory_space<vmem>>, vector<16x4xbf16>
    %c0_15 = arith.constant 0 : index
    %c4_16 = arith.constant 4 : index
    %32 = vector.load %arg10[%c0_15, %c4_16] : memref<16x32xbf16, #tpu.memory_space<vmem>>, vector<16x4xbf16>
    "tpu.trace_start"() <{level = 10 : i32, message = "qd,kd->qk"}> : () -> ()
    %cst_17 = arith.constant dense<0.000000e+00> : vector<8x16xf32>
    %33 = tpu.matmul %30, %31, %cst_17 {dimension_numbers = #tpu.dot_dimension_numbers<[1], [1], [0], [0], [0, 0, 1, 0], [], []>} : vector<8x4xbf16>, vector<16x4xbf16>, vector<8x16xf32> -> vector<8x16xf32>
    "tpu.trace_stop"() : () -> ()
    %cst_18 = arith.constant dense<0xFF800000> : vector<8xf32>
    %34 = vector.multi_reduction <maximumf>, %33, %cst_18 [1] : vector<8x16xf32> to vector<8xf32>
    %35 = vector.shape_cast %34 : vector<8xf32> to vector<8x1xf32>
    %36 = vector.broadcast %35 : vector<8x1xf32> to vector<8x16xf32>
    %37 = arith.subf %33, %36 : vector<8x16xf32>
    %38 = math.exp %37 : vector<8x16xf32>
    %cst_19 = arith.constant dense<0.000000e+00> : vector<8xf32>
    %39 = vector.multi_reduction <add>, %38, %cst_19 [1] : vector<8x16xf32> to vector<8xf32>
    %40 = vector.shape_cast %39 : vector<8xf32> to vector<8x1xf32>
    %41 = arith.truncf %38 : vector<8x16xf32> to vector<8x16xbf16>
    %cst_20 = arith.constant dense<0.000000e+00> : vector<8x4xf32>
    %42 = tpu.matmul %41, %32, %cst_20 {dimension_numbers = #tpu.dot_dimension_numbers<[1], [0], [0], [1], [0, 0, 1, 1], [], []>} : vector<8x16xbf16>, vector<16x4xbf16>, vector<8x4xf32> -> vector<8x4xf32>
    %43 = tpu.reciprocal %40 {approx = true} : vector<8x1xf32> -> vector<8x1xf32>
    %44 = vector.broadcast %43 : vector<8x1xf32> to vector<8x4xf32>
    %45 = arith.mulf %42, %44 : vector<8x4xf32>
    %46 = arith.truncf %45 : vector<8x4xf32> to vector<8x4xbf16>
    %c0_21 = arith.constant 0 : index
    %c4_22 = arith.constant 4 : index
    %47 = vector.load %arg11[%c0_21, %c4_22] : memref<8x32xbf16, #tpu.memory_space<vmem>>, vector<8x4xbf16>
    tpu.vector_store %arg11[%c0_21, %c4_22], %46 {strides = array<i32>} : memref<8x32xbf16, #tpu.memory_space<vmem>>, vector<8x4xbf16>,
    %48 = vector.extract_strided_slice %11 {offsets = [0, 8], sizes = [8, 4], strides = [1, 1]} : vector<8x32xbf16> to vector<8x4xbf16>
    %c0_23 = arith.constant 0 : index
    %c8 = arith.constant 8 : index
    %49 = vector.load %arg9[%c0_23, %c8] : memref<16x32xbf16, #tpu.memory_space<vmem>>, vector<16x4xbf16>
    %c0_24 = arith.constant 0 : index
    %c8_25 = arith.constant 8 : index
    %50 = vector.load %arg10[%c0_24, %c8_25] : memref<16x32xbf16, #tpu.memory_space<vmem>>, vector<16x4xbf16>
    "tpu.trace_start"() <{level = 10 : i32, message = "qd,kd->qk"}> : () -> ()
    %cst_26 = arith.constant dense<0.000000e+00> : vector<8x16xf32>
    %51 = tpu.matmul %48, %49, %cst_26 {dimension_numbers = #tpu.dot_dimension_numbers<[1], [1], [0], [0], [0, 0, 1, 0], [], []>} : vector<8x4xbf16>, vector<16x4xbf16>, vector<8x16xf32> -> vector<8x16xf32>
    "tpu.trace_stop"() : () -> ()
    %cst_27 = arith.constant dense<0xFF800000> : vector<8xf32>
    %52 = vector.multi_reduction <maximumf>, %51, %cst_27 [1] : vector<8x16xf32> to vector<8xf32>
    %53 = vector.shape_cast %52 : vector<8xf32> to vector<8x1xf32>
    %54 = vector.broadcast %53 : vector<8x1xf32> to vector<8x16xf32>
    %55 = arith.subf %51, %54 : vector<8x16xf32>
    %56 = math.exp %55 : vector<8x16xf32>
    %cst_28 = arith.constant dense<0.000000e+00> : vector<8xf32>
    %57 = vector.multi_reduction <add>, %56, %cst_28 [1] : vector<8x16xf32> to vector<8xf32>
    %58 = vector.shape_cast %57 : vector<8xf32> to vector<8x1xf32>
    %59 = arith.truncf %56 : vector<8x16xf32> to vector<8x16xbf16>
    %cst_29 = arith.constant dense<0.000000e+00> : vector<8x4xf32>
    %60 = tpu.matmul %59, %50, %cst_29 {dimension_numbers = #tpu.dot_dimension_numbers<[1], [0], [0], [1], [0, 0, 1, 1], [], []>} : vector<8x16xbf16>, vector<16x4xbf16>, vector<8x4xf32> -> vector<8x4xf32>
    %61 = tpu.reciprocal %58 {approx = true} : vector<8x1xf32> -> vector<8x1xf32>
    %62 = vector.broadcast %61 : vector<8x1xf32> to vector<8x4xf32>
    %63 = arith.mulf %60, %62 : vector<8x4xf32>
    %64 = arith.truncf %63 : vector<8x4xf32> to vector<8x4xbf16>
    %c0_30 = arith.constant 0 : index
    %c8_31 = arith.constant 8 : index
    %65 = vector.load %arg11[%c0_30, %c8_31] : memref<8x32xbf16, #tpu.memory_space<vmem>>, vector<8x4xbf16>
    tpu.vector_store %arg11[%c0_30, %c8_31], %64 {strides = array<i32>} : memref<8x32xbf16, #tpu.memory_space<vmem>>, vector<8x4xbf16>,
    %66 = vector.extract_strided_slice %11 {offsets = [0, 12], sizes = [8, 4], strides = [1, 1]} : vector<8x32xbf16> to vector<8x4xbf16>
    %c0_32 = arith.constant 0 : index
    %c12 = arith.constant 12 : index
    %67 = vector.load %arg9[%c0_32, %c12] : memref<16x32xbf16, #tpu.memory_space<vmem>>, vector<16x4xbf16>
    %c0_33 = arith.constant 0 : index
    %c12_34 = arith.constant 12 : index
    %68 = vector.load %arg10[%c0_33, %c12_34] : memref<16x32xbf16, #tpu.memory_space<vmem>>, vector<16x4xbf16>
    "tpu.trace_start"() <{level = 10 : i32, message = "qd,kd->qk"}> : () -> ()
    %cst_35 = arith.constant dense<0.000000e+00> : vector<8x16xf32>
    %69 = tpu.matmul %66, %67, %cst_35 {dimension_numbers = #tpu.dot_dimension_numbers<[1], [1], [0], [0], [0, 0, 1, 0], [], []>} : vector<8x4xbf16>, vector<16x4xbf16>, vector<8x16xf32> -> vector<8x16xf32>
    "tpu.trace_stop"() : () -> ()
    %cst_36 = arith.constant dense<0xFF800000> : vector<8xf32>
    %70 = vector.multi_reduction <maximumf>, %69, %cst_36 [1] : vector<8x16xf32> to vector<8xf32>
    %71 = vector.shape_cast %70 : vector<8xf32> to vector<8x1xf32>
    %72 = vector.broadcast %71 : vector<8x1xf32> to vector<8x16xf32>
    %73 = arith.subf %69, %72 : vector<8x16xf32>
    %74 = math.exp %73 : vector<8x16xf32>
    %cst_37 = arith.constant dense<0.000000e+00> : vector<8xf32>
    %75 = vector.multi_reduction <add>, %74, %cst_37 [1] : vector<8x16xf32> to vector<8xf32>
    %76 = vector.shape_cast %75 : vector<8xf32> to vector<8x1xf32>
    %77 = arith.truncf %74 : vector<8x16xf32> to vector<8x16xbf16>
    %cst_38 = arith.constant dense<0.000000e+00> : vector<8x4xf32>
    %78 = tpu.matmul %77, %68, %cst_38 {dimension_numbers = #tpu.dot_dimension_numbers<[1], [0], [0], [1], [0, 0, 1, 1], [], []>} : vector<8x16xbf16>, vector<16x4xbf16>, vector<8x4xf32> -> vector<8x4xf32>
    %79 = tpu.reciprocal %76 {approx = true} : vector<8x1xf32> -> vector<8x1xf32>
    %80 = vector.broadcast %79 : vector<8x1xf32> to vector<8x4xf32>
    %81 = arith.mulf %78, %80 : vector<8x4xf32>
    %82 = arith.truncf %81 : vector<8x4xf32> to vector<8x4xbf16>
    %c0_39 = arith.constant 0 : index
    %c12_40 = arith.constant 12 : index
    %83 = vector.load %arg11[%c0_39, %c12_40] : memref<8x32xbf16, #tpu.memory_space<vmem>>, vector<8x4xbf16>
    tpu.vector_store %arg11[%c0_39, %c12_40], %82 {strides = array<i32>} : memref<8x32xbf16, #tpu.memory_space<vmem>>, vector<8x4xbf16>,
    %84 = vector.extract_strided_slice %11 {offsets = [0, 16], sizes = [8, 4], strides = [1, 1]} : vector<8x32xbf16> to vector<8x4xbf16>
    %c0_41 = arith.constant 0 : index
    %c16 = arith.constant 16 : index
    %85 = vector.load %arg9[%c0_41, %c16] : memref<16x32xbf16, #tpu.memory_space<vmem>>, vector<16x4xbf16>
    %c0_42 = arith.constant 0 : index
    %c16_43 = arith.constant 16 : index
    %86 = vector.load %arg10[%c0_42, %c16_43] : memref<16x32xbf16, #tpu.memory_space<vmem>>, vector<16x4xbf16>
    "tpu.trace_start"() <{level = 10 : i32, message = "qd,kd->qk"}> : () -> ()
    %cst_44 = arith.constant dense<0.000000e+00> : vector<8x16xf32>
    %87 = tpu.matmul %84, %85, %cst_44 {dimension_numbers = #tpu.dot_dimension_numbers<[1], [1], [0], [0], [0, 0, 1, 0], [], []>} : vector<8x4xbf16>, vector<16x4xbf16>, vector<8x16xf32> -> vector<8x16xf32>
    "tpu.trace_stop"() : () -> ()
    %cst_45 = arith.constant dense<0xFF800000> : vector<8xf32>
    %88 = vector.multi_reduction <maximumf>, %87, %cst_45 [1] : vector<8x16xf32> to vector<8xf32>
    %89 = vector.shape_cast %88 : vector<8xf32> to vector<8x1xf32>
    %90 = vector.broadcast %89 : vector<8x1xf32> to vector<8x16xf32>
    %91 = arith.subf %87, %90 : vector<8x16xf32>
    %92 = math.exp %91 : vector<8x16xf32>
    %cst_46 = arith.constant dense<0.000000e+00> : vector<8xf32>
    %93 = vector.multi_reduction <add>, %92, %cst_46 [1] : vector<8x16xf32> to vector<8xf32>
    %94 = vector.shape_cast %93 : vector<8xf32> to vector<8x1xf32>
    %95 = arith.truncf %92 : vector<8x16xf32> to vector<8x16xbf16>
    %cst_47 = arith.constant dense<0.000000e+00> : vector<8x4xf32>
    %96 = tpu.matmul %95, %86, %cst_47 {dimension_numbers = #tpu.dot_dimension_numbers<[1], [0], [0], [1], [0, 0, 1, 1], [], []>} : vector<8x16xbf16>, vector<16x4xbf16>, vector<8x4xf32> -> vector<8x4xf32>
    %97 = tpu.reciprocal %94 {approx = true} : vector<8x1xf32> -> vector<8x1xf32>
    %98 = vector.broadcast %97 : vector<8x1xf32> to vector<8x4xf32>
    %99 = arith.mulf %96, %98 : vector<8x4xf32>
    %100 = arith.truncf %99 : vector<8x4xf32> to vector<8x4xbf16>
    %c0_48 = arith.constant 0 : index
    %c16_49 = arith.constant 16 : index
    %101 = vector.load %arg11[%c0_48, %c16_49] : memref<8x32xbf16, #tpu.memory_space<vmem>>, vector<8x4xbf16>
    tpu.vector_store %arg11[%c0_48, %c16_49], %100 {strides = array<i32>} : memref<8x32xbf16, #tpu.memory_space<vmem>>, vector<8x4xbf16>,
    %102 = vector.extract_strided_slice %11 {offsets = [0, 20], sizes = [8, 4], strides = [1, 1]} : vector<8x32xbf16> to vector<8x4xbf16>
    %c0_50 = arith.constant 0 : index
    %c20 = arith.constant 20 : index
    %103 = vector.load %arg9[%c0_50, %c20] : memref<16x32xbf16, #tpu.memory_space<vmem>>, vector<16x4xbf16>
    %c0_51 = arith.constant 0 : index
    %c20_52 = arith.constant 20 : index
    %104 = vector.load %arg10[%c0_51, %c20_52] : memref<16x32xbf16, #tpu.memory_space<vmem>>, vector<16x4xbf16>
    "tpu.trace_start"() <{level = 10 : i32, message = "qd,kd->qk"}> : () -> ()
    %cst_53 = arith.constant dense<0.000000e+00> : vector<8x16xf32>
    %105 = tpu.matmul %102, %103, %cst_53 {dimension_numbers = #tpu.dot_dimension_numbers<[1], [1], [0], [0], [0, 0, 1, 0], [], []>} : vector<8x4xbf16>, vector<16x4xbf16>, vector<8x16xf32> -> vector<8x16xf32>
    "tpu.trace_stop"() : () -> ()
    %cst_54 = arith.constant dense<0xFF800000> : vector<8xf32>
    %106 = vector.multi_reduction <maximumf>, %105, %cst_54 [1] : vector<8x16xf32> to vector<8xf32>
    %107 = vector.shape_cast %106 : vector<8xf32> to vector<8x1xf32>
    %108 = vector.broadcast %107 : vector<8x1xf32> to vector<8x16xf32>
    %109 = arith.subf %105, %108 : vector<8x16xf32>
    %110 = math.exp %109 : vector<8x16xf32>
    %cst_55 = arith.constant dense<0.000000e+00> : vector<8xf32>
    %111 = vector.multi_reduction <add>, %110, %cst_55 [1] : vector<8x16xf32> to vector<8xf32>
    %112 = vector.shape_cast %111 : vector<8xf32> to vector<8x1xf32>
    %113 = arith.truncf %110 : vector<8x16xf32> to vector<8x16xbf16>
    %cst_56 = arith.constant dense<0.000000e+00> : vector<8x4xf32>
    %114 = tpu.matmul %113, %104, %cst_56 {dimension_numbers = #tpu.dot_dimension_numbers<[1], [0], [0], [1], [0, 0, 1, 1], [], []>} : vector<8x16xbf16>, vector<16x4xbf16>, vector<8x4xf32> -> vector<8x4xf32>
    %115 = tpu.reciprocal %112 {approx = true} : vector<8x1xf32> -> vector<8x1xf32>
    %116 = vector.broadcast %115 : vector<8x1xf32> to vector<8x4xf32>
    %117 = arith.mulf %114, %116 : vector<8x4xf32>
    %118 = arith.truncf %117 : vector<8x4xf32> to vector<8x4xbf16>
    %c0_57 = arith.constant 0 : index
    %c20_58 = arith.constant 20 : index
    %119 = vector.load %arg11[%c0_57, %c20_58] : memref<8x32xbf16, #tpu.memory_space<vmem>>, vector<8x4xbf16>
    tpu.vector_store %arg11[%c0_57, %c20_58], %118 {strides = array<i32>} : memref<8x32xbf16, #tpu.memory_space<vmem>>, vector<8x4xbf16>,
    %120 = vector.extract_strided_slice %11 {offsets = [0, 24], sizes = [8, 4], strides = [1, 1]} : vector<8x32xbf16> to vector<8x4xbf16>
    %c0_59 = arith.constant 0 : index
    %c24 = arith.constant 24 : index
    %121 = vector.load %arg9[%c0_59, %c24] : memref<16x32xbf16, #tpu.memory_space<vmem>>, vector<16x4xbf16>
    %c0_60 = arith.constant 0 : index
    %c24_61 = arith.constant 24 : index
    %122 = vector.load %arg10[%c0_60, %c24_61] : memref<16x32xbf16, #tpu.memory_space<vmem>>, vector<16x4xbf16>
    "tpu.trace_start"() <{level = 10 : i32, message = "qd,kd->qk"}> : () -> ()
    %cst_62 = arith.constant dense<0.000000e+00> : vector<8x16xf32>
    %123 = tpu.matmul %120, %121, %cst_62 {dimension_numbers = #tpu.dot_dimension_numbers<[1], [1], [0], [0], [0, 0, 1, 0], [], []>} : vector<8x4xbf16>, vector<16x4xbf16>, vector<8x16xf32> -> vector<8x16xf32>
    "tpu.trace_stop"() : () -> ()
    %cst_63 = arith.constant dense<0xFF800000> : vector<8xf32>
    %124 = vector.multi_reduction <maximumf>, %123, %cst_63 [1] : vector<8x16xf32> to vector<8xf32>
    %125 = vector.shape_cast %124 : vector<8xf32> to vector<8x1xf32>
    %126 = vector.broadcast %125 : vector<8x1xf32> to vector<8x16xf32>
    %127 = arith.subf %123, %126 : vector<8x16xf32>
    %128 = math.exp %127 : vector<8x16xf32>
    %cst_64 = arith.constant dense<0.000000e+00> : vector<8xf32>
    %129 = vector.multi_reduction <add>, %128, %cst_64 [1] : vector<8x16xf32> to vector<8xf32>
    %130 = vector.shape_cast %129 : vector<8xf32> to vector<8x1xf32>
    %131 = arith.truncf %128 : vector<8x16xf32> to vector<8x16xbf16>
    %cst_65 = arith.constant dense<0.000000e+00> : vector<8x4xf32>
    %132 = tpu.matmul %131, %122, %cst_65 {dimension_numbers = #tpu.dot_dimension_numbers<[1], [0], [0], [1], [0, 0, 1, 1], [], []>} : vector<8x16xbf16>, vector<16x4xbf16>, vector<8x4xf32> -> vector<8x4xf32>
    %133 = tpu.reciprocal %130 {approx = true} : vector<8x1xf32> -> vector<8x1xf32>
    %134 = vector.broadcast %133 : vector<8x1xf32> to vector<8x4xf32>
    %135 = arith.mulf %132, %134 : vector<8x4xf32>
    %136 = arith.truncf %135 : vector<8x4xf32> to vector<8x4xbf16>
    %c0_66 = arith.constant 0 : index
    %c24_67 = arith.constant 24 : index
    %137 = vector.load %arg11[%c0_66, %c24_67] : memref<8x32xbf16, #tpu.memory_space<vmem>>, vector<8x4xbf16>
    tpu.vector_store %arg11[%c0_66, %c24_67], %136 {strides = array<i32>} : memref<8x32xbf16, #tpu.memory_space<vmem>>, vector<8x4xbf16>,
    %138 = vector.extract_strided_slice %11 {offsets = [0, 28], sizes = [8, 4], strides = [1, 1]} : vector<8x32xbf16> to vector<8x4xbf16>
    %c0_68 = arith.constant 0 : index
    %c28 = arith.constant 28 : index
    %139 = vector.load %arg9[%c0_68, %c28] : memref<16x32xbf16, #tpu.memory_space<vmem>>, vector<16x4xbf16>
    %c0_69 = arith.constant 0 : index
    %c28_70 = arith.constant 28 : index
    %140 = vector.load %arg10[%c0_69, %c28_70] : memref<16x32xbf16, #tpu.memory_space<vmem>>, vector<16x4xbf16>
    "tpu.trace_start"() <{level = 10 : i32, message = "qd,kd->qk"}> : () -> ()
    %cst_71 = arith.constant dense<0.000000e+00> : vector<8x16xf32>
    %141 = tpu.matmul %138, %139, %cst_71 {dimension_numbers = #tpu.dot_dimension_numbers<[1], [1], [0], [0], [0, 0, 1, 0], [], []>} : vector<8x4xbf16>, vector<16x4xbf16>, vector<8x16xf32> -> vector<8x16xf32>
    "tpu.trace_stop"() : () -> ()
    %cst_72 = arith.constant dense<0xFF800000> : vector<8xf32>
    %142 = vector.multi_reduction <maximumf>, %141, %cst_72 [1] : vector<8x16xf32> to vector<8xf32>
    %143 = vector.shape_cast %142 : vector<8xf32> to vector<8x1xf32>
    %144 = vector.broadcast %143 : vector<8x1xf32> to vector<8x16xf32>
    %145 = arith.subf %141, %144 : vector<8x16xf32>
    %146 = math.exp %145 : vector<8x16xf32>
    %cst_73 = arith.constant dense<0.000000e+00> : vector<8xf32>
    %147 = vector.multi_reduction <add>, %146, %cst_73 [1] : vector<8x16xf32> to vector<8xf32>
    %148 = vector.shape_cast %147 : vector<8xf32> to vector<8x1xf32>
    %149 = arith.truncf %146 : vector<8x16xf32> to vector<8x16xbf16>
    %cst_74 = arith.constant dense<0.000000e+00> : vector<8x4xf32>
    %150 = tpu.matmul %149, %140, %cst_74 {dimension_numbers = #tpu.dot_dimension_numbers<[1], [0], [0], [1], [0, 0, 1, 1], [], []>} : vector<8x16xbf16>, vector<16x4xbf16>, vector<8x4xf32> -> vector<8x4xf32>
    %151 = tpu.reciprocal %148 {approx = true} : vector<8x1xf32> -> vector<8x1xf32>
    %152 = vector.broadcast %151 : vector<8x1xf32> to vector<8x4xf32>
    %153 = arith.mulf %150, %152 : vector<8x4xf32>
    %154 = arith.truncf %153 : vector<8x4xf32> to vector<8x4xbf16>
    %c0_75 = arith.constant 0 : index
    %c28_76 = arith.constant 28 : index
    %155 = vector.load %arg11[%c0_75, %c28_76] : memref<8x32xbf16, #tpu.memory_space<vmem>>, vector<8x4xbf16>
    tpu.vector_store %arg11[%c0_75, %c28_76], %154 {strides = array<i32>} : memref<8x32xbf16, #tpu.memory_space<vmem>>, vector<8x4xbf16>,
    %c0_77 = arith.constant 0 : index
    %c0_78 = arith.constant 0 : index
    %156 = vector.load %arg11[%c0_77, %c0_78] : memref<8x32xbf16, #tpu.memory_space<vmem>>, vector<8x32xbf16>
    %c0_79 = arith.constant 0 : index
    %c0_80 = arith.constant 0 : index
    %157 = vector.load %arg6[%c0_79, %c0_80] : memref<32x32xbf16, #tpu.memory_space<vmem>>, vector<32x32xbf16>
    %cst_81 = arith.constant dense<0.000000e+00> : vector<8x32xf32>
    %158 = tpu.matmul %156, %157, %cst_81 {dimension_numbers = #tpu.dot_dimension_numbers<[1], [0], [0], [1], [0, 0, 1, 1], [], []>} : vector<8x32xbf16>, vector<32x32xbf16>, vector<8x32xf32> -> vector<8x32xf32>
    %c0_82 = arith.constant 0 : index
    %c0_83 = arith.constant 0 : index
    %159 = vector.load %arg7[%c0_82, %c0_83] : memref<1x32xf32, #tpu.memory_space<vmem>>, vector<1x32xf32>
    %160 = vector.broadcast %159 : vector<1x32xf32> to vector<8x32xf32>
    %161 = arith.addf %158, %160 : vector<8x32xf32>
    %c0_84 = arith.constant 0 : index
    %c0_85 = arith.constant 0 : index
    %c0_86 = arith.constant 0 : index
    %162 = vector.load %arg8[%c0_84, %c0_85, %c0_86] : memref<1x8x32xf32, #tpu.memory_space<vmem>>, vector<1x8x32xf32>
    %163 = vector.shape_cast %162 : vector<1x8x32xf32> to vector<8x32xf32>
    %164 = vector.shape_cast %161 : vector<8x32xf32> to vector<1x8x32xf32>
    tpu.vector_store %arg8[%c0_84, %c0_85, %c0_86], %164 {strides = array<i32>} : memref<1x8x32xf32, #tpu.memory_space<vmem>>, vector<1x8x32xf32>,
    return
  }
  func.func @transform_0(%arg0: i32, %arg1: i32) -> (i32, i32, i32) {
    %c0_i32 = arith.constant 0 : i32
    %c0_i32_0 = arith.constant 0 : i32
    %c0_i32_1 = arith.constant 0 : i32
    return %arg0, %c0_i32, %c0_i32_0 : i32, i32, i32
  }
  func.func @transform_1(%arg0: i32, %arg1: i32) -> (i32, i32) {
    %c0_i32 = arith.constant 0 : i32
    %c0_i32_0 = arith.constant 0 : i32
    %c0_i32_1 = arith.constant 0 : i32
    return %c0_i32, %c0_i32_0 : i32, i32
  }
  func.func @transform_2(%arg0: i32, %arg1: i32) -> (i32, i32) {
    %c0_i32 = arith.constant 0 : i32
    %c0_i32_0 = arith.constant 0 : i32
    %c0_i32_1 = arith.constant 0 : i32
    return %c0_i32, %c0_i32_0 : i32, i32
  }
  func.func @transform_3(%arg0: i32, %arg1: i32) -> (i32, i32) {
    %c0_i32 = arith.constant 0 : i32
    %c0_i32_0 = arith.constant 0 : i32
    %c0_i32_1 = arith.constant 0 : i32
    return %c0_i32, %c0_i32_0 : i32, i32
  }
  func.func @transform_4(%arg0: i32, %arg1: i32) -> (i32, i32) {
    %c0_i32 = arith.constant 0 : i32
    %c0_i32_0 = arith.constant 0 : i32
    %c0_i32_1 = arith.constant 0 : i32
    return %c0_i32, %c0_i32_0 : i32, i32
  }
  func.func @transform_5(%arg0: i32, %arg1: i32) -> (i32, i32) {
    %c0_i32 = arith.constant 0 : i32
    %c0_i32_0 = arith.constant 0 : i32
    %c0_i32_1 = arith.constant 0 : i32
    return %c0_i32, %c0_i32_0 : i32, i32
  }
  func.func @transform_6(%arg0: i32, %arg1: i32) -> (i32, i32, i32) {
    %c0_i32 = arith.constant 0 : i32
    %c0_i32_0 = arith.constant 0 : i32
    return %arg0, %arg1, %c0_i32 : i32, i32, i32
  }
}

</mosaic_0001>

<bundles_post_ra>
// kernel: tpu_custom_call.1
= control target key start
LH: loop header
LB: loop body
LE: loop exit
PB: predicated region body
PF: predicated region fallthrough
CT: control target
= control target key end

     0   :  { %s2999_s0 = inlined_call_operand.hbm [shape: f32[2,16,32], index: 0, kind: input, shape index: {}]   ;;  %s3000_s1 = inlined_call_operand.hbm [shape: bf16[32,32], index: 1, kind: input, shape index: {}]   ;;  %s3001_s2 = inlined_call_operand.hbm [shape: bf16[32,32], index: 2, kind: input, shape index: {}]   ;;  %s3002_s3 = inlined_call_operand.hbm [shape: bf16[32,32], index: 3, kind: input, shape index: {}]   ;;  %s3003_s4 = inlined_call_operand.hbm [shape: bf16[32,32], index: 4, kind: input, shape index: {}]   ;;  %s3004_s5 = inlined_call_operand.vmem [shape: f32[1,32], index: 5, kind: input, shape index: {}]   ;;  %s3005_s6 = inlined_call_operand.hbm [shape: f32[2,16,32], index: 6, kind: output, shape index: {}]  }
   0x1   :  { %3017 = sst [smem:[#allocation24_spill]] %s3000_s1 }
   0x2   :  { %3018 = sst [smem:[#allocation25_spill]] %s3001_s2 }
   0x3   :  { %3019 = sst [smem:[#allocation26_spill]] %s3004_s5 }
   0x4   :  { %3020 = sst [smem:[#allocation27_spill]] %s3005_s6 }
   0x5   :  { %11 = vsyncpa [#allocation6], 0 }
   0x6   :  { %13 = vsyncpa [#allocation6 + $0x1], 0 }
   0x7   :  { %14 = vsyncpa [#allocation9], 0 }
   0x8   :  { %15 = vsyncpa [#allocation12], 0 }
   0x9   :  { %16 = vsyncpa [#allocation7], 0 }
   0xa   :  { %18 = vsyncpa [#allocation7 + $0x1], 0  ;;  %s2483_s21 = smov 0   ;;  %s2485_s22 = smov 0  }
   0xb   :  { %s2487_s23 = smov 0   ;;  %s2489_s24 = smov 0  }
   0xc   :  { %s2491_s25 = smov 0   ;;  %s2493_s26 = smov 0  }
   0xd   :  { %s2495_s27 = smov 0   ;;  %s2497_s28 = smov 0  }
   0xe   :  { %s2499_s29 = smov 0   ;;  %s2501_s30 = smov 0  }
   0xf   :  { %s2503_s7 = smov 0  }
  0x10 LB: > { %3021 = sst [smem:[#allocation19_spill]] %s2378_s21  ;;  %s1700_s8 = sadd.s32 4294967295, %s2418_s7   ;;  %s2418_s7 = sphi %s2503_s7, %s24_s7   ;;  %s2414_s30 = sphi %s2501_s30, %s3059_s30   ;;  %s2410_s29 = sphi %s2499_s29, %s3058_s29   ;;  %s2406_s28 = sphi %s2497_s28, %s3057_s28   ;;  %s2402_s27 = sphi %s2495_s27, %s3056_s27   ;;  %s2398_s26 = sphi %s2493_s26, %s3055_s26   ;;  %s2394_s25 = sphi %s2491_s25, %s3054_s25   ;;  %s2390_s24 = sphi %s2489_s24, %s3053_s24   ;;  %s2386_s23 = sphi %s2487_s23, %s3052_s23   ;;  %s2382_s22 = sphi %s2485_s22, %s3051_s22   ;;  %s2378_s21 = sphi %s2483_s21, %s3050_s21  }
  0x11   : > { %3022 = sst [smem:[#allocation20_spill]] %s2402_s27  ;;  %s1701_s9 = sadd.s32 4294967294, %s2418_s7  }
  0x12   : > { %3023 = sst [smem:[#allocation21_spill]] %s2406_s28  ;;  %p56_p0 = scmp.ne.s32.totalorder %s2394_s25, %s2390_s24 }
  0x13   : > { %p2539_p1 = scmp.eq.s32.totalorder %s1700_s8, 0  ;;  %p186_p2 = scmp.ne.s32.totalorder %s2386_s23, %s2382_s22 }
  0x14   : > { %p187_p3 = scmp.eq.s32.totalorder %s1700_s8, 3  ;;  %p192_p5 = scmp.ne.s32.totalorder %s2382_s22, %s2378_s21 }
  0x15   : > { %s3024_s10 = scalar_select %p2539_p1, 1, 0 }
  0x16   : > { %p2547_p4 = por %p2539_p1, %p56_p0  ;;  %p2553_p6 = por %p187_p3, %p186_p2 }
  0x17   : > { %p193_p7 = scmp.eq.s32.totalorder %s1701_s9, 3  ;;  %p1702_p8 = scmp.ge.s32.totalorder %s2418_s7, 1 }
  0x18   : > { %s3025_s11 = scalar_select %p2547_p4, 1, 0 }
  0x19   : > { %s3026_s12 = scalar_select %p2553_p6, 1, 0 }
  0x1a   : > { %p200_p9 = scmp.lt.s32.totalorder %s2418_s7, 5  ;;  %p2559_p10 = por %p193_p7, %p192_p5 }
  0x1b   : > { %3027 = sst [smem:[#allocation22_spill]] %s3026_s12  ;;  %s2420_s15 = smov [#allocation8]  }
  0x1c   : > { %s3028_s13 = scalar_select %p2559_p10, 1, 0 }
  0x1d   : > { %p2563_p11 = pnand %p1702_p8, %p200_p9  ;;  %s212_s16 = sshll.u32 %s2420_s15, 4  ;;  %s213_s16 = int_to_ptr.vmem [resolvable:$true] %s212_s16 }
  0x1e   : > { %3029 = sst [smem:[#allocation23_spill]] %s3028_s13  ;;  %s2421_s18 = smov [#allocation11]  }
  0x1f   : > { %s3030_s14 = scalar_select %p2563_p11, 1, 0 }
  0x20   : > { %p1961_p12 = pneg %p2563_p11  ;;  %s238_s19 = sshll.u32 %s2421_s18, 4  ;;  %s2575_s19 = int_to_ptr.vmem [resolvable:$true] %s238_s19 }
  0x21   : > { %s3032_s1 = sld [smem:[#allocation24_spill]] }
  0x22   : > { %p2571_p13 = pnand %p1961_p12, %p2539_p1 }
  0x24   : > { %p2585_p2 = pneg %p2571_p13 }
  0x27   : > { %s2146_s8 = scalar_lea.hbm %s3032_s1, 256 }
  0x28   : > { %p2147_p0 = scmp.ne.s32.totalorder %s3032_s1, %s2146_s8  ;;  %p2153_p7 = scmp.lt.u32.totalorder %s2146_s8, %s3032_s1 }
  0x2a   : > { %p2149_p3 = pnand %p2585_p2, %p2147_p0 }
  0x2c   : > { %p2150_p5 = pneg %p2149_p3 }
  0x2e   : > { %p2155_p8 = pnand %p2153_p7, %p2150_p5 }
  0x30   : > { %2158 = shalt.err (!%p2155_p8)
}
  0x31   : > { %s2159_s20 = scalar_lea.vmem %s213_s16, 256  ;;  %p2167_p6 = scmp.lt.s32.totalorder %s213_s16, %s213_s16 }
  0x32   : > { %p2160_p9 = scmp.ne.s32.totalorder %s213_s16, %s2159_s20  ;;  %p2168_p1 = scmp.lt.s32.totalorder %s2159_s20, %s2159_s20 }
  0x34   : > { %p2162_p12 = pnand %p2160_p9, %p2585_p2  ;;  %p2169_p4 = por %p2168_p1, %p2167_p6 }
  0x36   : > { %p2163_p10 = pneg %p2162_p12 }
  0x38   : > { %p2170_p11 = pnand %p2169_p4, %p2163_p10 }
  0x3a   : > { %2173 = shalt.err (!%p2170_p11)
}
  0x3b   : > { %s2422_s13 = smov 64   ;;  %s2423_s24 = smov 4  }
  0x3c   : > { %1964 = dma.hbm_to_vmem [thread:$0]  (!%p2571_p13), %s3032_s1, 256, %s213_s16, [#allocation9], %s2422_s13, %s2422_s13, %s2423_s24  }
  0x3d   : > { %s2174_s6 = scalar_lea.hbm %s3002_s3, 256 }
  0x3e   : > { %p2175_p1 = scmp.ne.s32.totalorder %s3002_s3, %s2174_s6  ;;  %p2181_p10 = scmp.lt.u32.totalorder %s2174_s6, %s3002_s3 }
  0x40   : > { %p2177_p4 = pnand %p2175_p1, %p2585_p2 }
  0x42   : > { %p2178_p6 = pneg %p2177_p4 }
  0x44   : > { %p2183_p11 = pnand %p2181_p10, %p2178_p6 }
  0x46   : > { %2186 = shalt.err (!%p2183_p11)
}
  0x47   : > { %s2187_s16 = scalar_lea.vmem %s2575_s19, 256  ;;  %p2195_p7 = scmp.lt.s32.totalorder %s2575_s19, %s2575_s19 }
  0x48   : > { %p2188_p0 = scmp.ne.s32.totalorder %s2575_s19, %s2187_s16  ;;  %p2196_p8 = scmp.lt.s32.totalorder %s2187_s16, %s2187_s16 }
  0x4a   : > { %p2190_p3 = pnand %p2188_p0, %p2585_p2  ;;  %p2197_p9 = por %p2196_p8, %p2195_p7 }
  0x4c   : > { %p2191_p5 = pneg %p2190_p3 }
  0x4e   : > { %p2198_p12 = pnand %p2197_p9, %p2191_p5 }
  0x50   : > { %2201 = shalt.err (!%p2198_p12)
}
  0x51   : > { %1970 = dma.hbm_to_vmem [thread:$0]  (!%p2571_p13), %s3002_s3, 256, %s2575_s19, [#allocation12], %s2422_s13, %s2422_s13, %s2423_s24  }
  0x52   : > { %s2424_s28 = smov [#allocation10]   ;;  %s2425_s21 = smov [#allocation13]  }
  0x53   : > { %s225_s12 = sshll.u32 %s2424_s28, 4  ;;  %s251_s8 = sshll.u32 %s2425_s21, 4  ;;  %s226_s12 = int_to_ptr.vmem [resolvable:$true] %s225_s12  ;;  %s252_s8 = int_to_ptr.vmem [resolvable:$true] %s251_s8 }
  0x54   : > { %s3034_s2 = sld [smem:[#allocation25_spill]] }
  0x5a   : > { %s2202_s20 = scalar_lea.hbm %s3034_s2, 256 }
  0x5b   : > { %p2203_p1 = scmp.ne.s32.totalorder %s3034_s2, %s2202_s20  ;;  %p2209_p10 = scmp.lt.u32.totalorder %s2202_s20, %s3034_s2 }
  0x5d   : > { %p2205_p4 = pnand %p2203_p1, %p2585_p2 }
  0x5f   : > { %p2206_p6 = pneg %p2205_p4 }
  0x61   : > { %p2211_p11 = pnand %p2209_p10, %p2206_p6 }
  0x63   : > { %2214 = shalt.err (!%p2211_p11)
}
  0x64   : > { %s2215_s19 = scalar_lea.vmem %s226_s12, 256  ;;  %p2223_p7 = scmp.lt.s32.totalorder %s226_s12, %s226_s12 }
  0x65   : > { %p2216_p0 = scmp.ne.s32.totalorder %s226_s12, %s2215_s19  ;;  %p2224_p8 = scmp.lt.s32.totalorder %s2215_s19, %s2215_s19 }
  0x67   : > { %p2218_p3 = pnand %p2216_p0, %p2585_p2  ;;  %p2225_p9 = por %p2224_p8, %p2223_p7 }
  0x69   : > { %p2219_p5 = pneg %p2218_p3 }
  0x6b   : > { %p2226_p12 = pnand %p2225_p9, %p2219_p5 }
  0x6d   : > { %2229 = shalt.err (!%p2226_p12)
}
  0x6e   : > { %1967 = dma.hbm_to_vmem [thread:$0]  (!%p2571_p13), %s3034_s2, 256, %s226_s12, [#allocation9], %s2422_s13, %s2422_s13, %s2423_s24  }
  0x6f   : > { %s2230_s21 = scalar_lea.hbm %s3003_s4, 256 }
  0x70   : > { %p2231_p1 = scmp.ne.s32.totalorder %s3003_s4, %s2230_s21  ;;  %p2237_p10 = scmp.lt.u32.totalorder %s2230_s21, %s3003_s4 }
  0x72   : > { %p2233_p4 = pnand %p2231_p1, %p2585_p2 }
  0x74   : > { %p2234_p6 = pneg %p2233_p4 }
  0x76   : > { %p2239_p11 = pnand %p2237_p10, %p2234_p6 }
  0x78   : > { %2242 = shalt.err (!%p2239_p11)
}
  0x79   : > { %s2243_s5 = scalar_lea.vmem %s252_s8, 256  ;;  %p2251_p7 = scmp.lt.s32.totalorder %s252_s8, %s252_s8 }
  0x7a   : > { %p2244_p0 = scmp.ne.s32.totalorder %s252_s8, %s2243_s5  ;;  %p2252_p8 = scmp.lt.s32.totalorder %s2243_s5, %s2243_s5 }
  0x7c   : > { %p2246_p3 = pnand %p2244_p0, %p2585_p2  ;;  %p2253_p9 = por %p2252_p8, %p2251_p7 }
  0x7e   : > { %p2247_p5 = pneg %p2246_p3 }
  0x80   : > { %p2254_p12 = pnand %p2253_p9, %p2247_p5 }
  0x82   : > { %2257 = shalt.err (!%p2254_p12)
}
  0x83   : > { %1973 = dma.hbm_to_vmem [thread:$0]  (!%p2571_p13), %s3003_s4, 256, %s252_s8, [#allocation12], %s2422_s13, %s2422_s13, %s2423_s24  }
  0x84   : > { %s33_s17 = sadd.s32 1, %s2410_s29  ;;  %s36_s15 = sadd.s32 1, %s2414_s30 }
  0x85   : > { %p34_p2 = scmp.ge.s32.totalorder %s33_s17, 2  ;;  %s43_s1 = sadd.s32 1, %s2398_s26 }
  0x86   : > { %p50_p1 = scmp.ne.s32.totalorder %s2398_s26, %s2394_s25  ;;  %p51_p4 = scmp.eq.s32.totalorder %s2418_s7, 0 }
  0x87   : > { %s3061_s17 = smov (%p34_p2, %s33_s17), 0  ;;  %s3063_s15 = smov (!%p34_p2, %s36_s15), %s2414_s30 }
  0x88   : > { %s172_s27 = ssub.s32 %s2410_s29, %s3061_s17  ;;  %p38_p6 = scmp.ge.s32.totalorder %s3063_s15, 2 }
  0x89   : > { %s176_s6 = sadd.s32 1, %s2386_s23  ;;  %p2684_p10 = por %p51_p4, %p50_p1 }
  0x8a   : > { %p1986_p13 = scmp.lt.s32.totalorder %s2418_s7, 4  ;;  %s3065_s15 = smov (%p38_p6, %s3063_s15), 0 }
  0x8b   : > { %s268_s24 = sand.u32 1, %s2398_s26   ;;  %s1761_s8 = sshll.u32 %s2414_s30, 8 }
  0x8c   : > { %s40_s28 = ssub.s32 %s2414_s30, %s3065_s15  ;;  %s1708_s9 = sshll.u32 %s268_s24, 4 }
  0x8d   : > { %p41_p11 = scmp.eq.s32.totalorder %s40_s28, 0  ;;  %s173_s21 = sor.u32 %s172_s27, %s40_s28 }
  0x8e   : > { %p174_p0 = scmp.eq.s32.totalorder %s173_s21, 0  ;;  %s2704_s12 = scalar_lea.hbm %s2999_s0, %s1761_s8 }
  0x8f   : > { %s2696_s18 = scalar_select %p41_p11, %s2398_s26, %s43_s1  }
  0x90   : > { %s2699_s20 = scalar_select %p174_p0, %s2386_s23, %s176_s6  }
  0x91   : > { %s272_s19 = scalar_lea.vmem [#allocation5], %s1708_s9  ;;  %p2710_p3 = pnand %p1986_p13, %p2684_p10 }
  0x92   : > { %s279_s2 = sshll.u32 %s272_s19, 4  ;;  %s2716_s1 = scalar_lea.sflag [#allocation6], %s268_s24  ;;  %s2714_s2 = int_to_ptr.vmem [resolvable:$true] %s279_s2 }
  0x93   : > { %s2258_s6 = scalar_lea.hbm %s2704_s12, 256  ;;  %p2260_p7 = pneg %p2710_p3 }
  0x94   : > { %p2259_p5 = scmp.ne.s32.totalorder %s2704_s12, %s2258_s6  ;;  %s2263_s28 = scalar_lea.hbm %s2999_s0, 512 }
  0x95   : > { %p2264_p12 = scmp.lt.u32.totalorder %s2704_s12, %s2999_s0  ;;  %p2265_p2 = scmp.lt.u32.totalorder %s2263_s28, %s2258_s6 }
  0x96   : > { %p2261_p8 = pnand %p2260_p7, %p2259_p5  ;;  %p2267_p4 = scmp.lt.u32.totalorder %s2258_s6, %s2704_s12 }
  0x97   : > { %p2266_p1 = por %p2265_p2, %p2264_p12 }
  0x98   : > { %p2262_p9 = pneg %p2261_p8 }
  0x99   : > { %p2268_p6 = por %p2267_p4, %p2266_p1 }
  0x9b   : > { %p2269_p10 = pnand %p2268_p6, %p2262_p9 }
  0x9d   : > { %2272 = shalt.err (!%p2269_p10)
}
  0x9e   : > { %s2273_s24 = scalar_lea.vmem %s2714_s2, 256  ;;  %s2426_s16 = smov [#allocation5]  }
  0x9f   : > { %p2274_p13 = scmp.ne.s32.totalorder %s2714_s2, %s2273_s24  ;;  %s2278_s5 = sshll.u32 %s2426_s16, 4  ;;  %s2279_s5 = int_to_ptr.vmem [resolvable:$false] %s2278_s5 }
  0xa0   : > { %s2280_s19 = scalar_lea.vmem %s2279_s5, 512  ;;  %p2281_p5 = scmp.lt.s32.totalorder %s2714_s2, %s2279_s5 }
  0xa1   : > { %p2276_p11 = pnand %p2274_p13, %p2260_p7  ;;  %p2282_p8 = scmp.lt.s32.totalorder %s2280_s19, %s2273_s24 }
  0xa3   : > { %p2277_p0 = pneg %p2276_p11  ;;  %p2283_p12 = por %p2282_p8, %p2281_p5 }
  0xa5   : > { %p2284_p2 = pnand %p2283_p12, %p2277_p0 }
  0xa7   : > { %2287 = shalt.err (!%p2284_p2)
}
  0xa8   : > { %s2427_s6 = smov 128   ;;  %s2428_s13 = smov 8  }
  0xa9   : > { %1977 = dma.hbm_to_vmem [thread:$0]  (!%p2710_p3), %s2704_s12, 256, %s2714_s2, %s2716_s1, %s2427_s6, %s2427_s6, %s2428_s13  }
  0xaa   : > { %p3037_p7 = scmp.ne.s32.totalorder %s3030_s14, 0 }
  0xab   : > { %s293_s8 = sand.u32 (!%p3037_p7), 1, %s2394_s25   ;;  %p3038_p9 = scmp.ne.s32.totalorder (!%p3037_p7), %s3025_s11, 0 }
  0xac   : > { %291 = sbr.rel (%p3037_p7) target bundleno = 1775 (0x6ef), region = 44  ;;  %s1712_s28 = sshll.u32 (!%p3037_p7), %s293_s8, 4 }
  0xad   : > { %s294_s21 = scalar_lea.sflag (!%p3037_p7), [#allocation6], %s293_s8  ;;  %s2747_s9 = scalar_lea.vmem (!%p3037_p7), [#allocation5], %s1712_s28 }
  0xb3   : > { %2361 = dma.done.wait (%p3038_p9), %s294_s21, 256  }
  0xb4   : > { %2363 = vsyncadd (%p3038_p9), %s294_s21, 4294967040  ;;  %p3039_p1 = scmp.ne.s32.totalorder %s3024_s10, 0 }
  0xb6   : > { %2365 = dma.done.wait (%p3039_p1), [#allocation9], 512  }
  0xb7   : > { %2367 = vsyncadd (%p3039_p1), [#allocation9], 4294966784 }
  0xb8   : > { %2369 = dma.done.wait (%p3039_p1), [#allocation12], 512  }
  0xb9   : > { %2371 = vsyncadd (%p3039_p1), [#allocation12], 4294966784  ;;  %s339_s2 = sand.u32 1, %s2382_s22   ;;  %s3040_s12 = sld [smem:[#allocation20_spill]] }
  0xba   : > { %s2764_s14 = sshll.u32 %s339_s2, 3 }
  0xbb   : > { %s341_s11 = scalar_lea.vmem [#allocation14], %s2764_s14 }
  0xbf   : > { %p1718_p3 = scmp.ne.s32.totalorder %s3040_s12, 0 }
  0xc0   : > { %v2106_v0 = vld [vmem:[#allocation10] sm:$0xff] (!%p1718_p3)   ;;  %v2429_v1 = vmov (!%p1718_p3), 0.0   ;;  %v2107_v2 = vld [vmem:[#allocation11] sm:$0xff] (!%p1718_p3)   ;;  %v2108_v3 = vld [vmem:[#allocation10 + $0x8] sm:$0xff] (!%p1718_p3)   ;;  %vm2430_vm0 = vmmov (!%p1718_p3), 0   ;;  %vm366_vm1 = vcmask (!%p1718_p3), 261120  }
  0xc1   : > { %346 = sbr.rel (%p1718_p3) target bundleno = 419 (0x1a3), region = 68  ;;  %1813 = vmatprep.subr.bf16.mxu0 (!%p1718_p3), %v2429_v1  ;;  %1821 = vmatprep.subr.bf16.mxu1 (!%p1718_p3), %v2429_v1  ;;  %v2109_v4 = vld [vmem:[#allocation11 + $0x8] sm:$0xff] (!%p1718_p3)   ;;  %v347_v5 = vld [vmem:[%s2747_s9] sm:$0xff] (!%p1718_p3) }
  0xc2   : > { %1814 = vmatpush3.bf16.msra.mxu0 (!%p1718_p3), %v2106_v0  ;;  %1817 = vmatprep.mubr.msk.bf16.mxu0 (!%p1718_p3), %vm2430_vm0, %v2429_v1  ;;  %v348_v6 = vld [vmem:[%s2747_s9 + $0x8] sm:$0xff] (!%p1718_p3) }
  0xc3   : > { %1822 = vmatpush3.bf16.msra.mxu1 (!%p1718_p3), %v2107_v2  ;;  %1815 = vmatprep.subr.bf16.mxu0 (!%p1718_p3), %v2429_v1  ;;  %v349_v7 = vpack.c.bf16 (!%p1718_p3), %v348_v6, %v347_v5 }
  0xc4   : > { %1823 = vmatprep.subr.bf16.mxu1 (!%p1718_p3), %v2429_v1  ;;  %1825 = vmatprep.mubr.msk.bf16.mxu1 (!%p1718_p3), %vm2430_vm0, %v2429_v1 }
  0xc6   : > { %1816 = vmatpush3.bf16.msra.mxu0 (!%p1718_p3), %v2108_v3 }
  0xc7   : > { %1824 = vmatpush3.bf16.msra.mxu1 (!%p1718_p3), %v2109_v4 }
  0xc9   : > { %1818 = vmatmul.mubr.msk.bf16.vlgmr.msra.gmra.mrb[0].mxu0 %vm366_vm1, %v349_v7 }
  0xca   : > { %1826 = vmatmul.mubr.msk.bf16.vlgmr.msra.gmra.mrb[0].mxu1 %vm366_vm1, %v349_v7 }
 0x19c   : > { %v404_v8 = vpop.f32.mrb[0].mxu0 }
 0x19d   : > { %v463_v9 = vpop.f32.mrb[0].mxu1  ;;  %v1819_v10 = vpop.f32.mrb[1].mxu0 }
 0x19e   : > { %v1827_v11 = vpop.f32.mrb[1].mxu1  ;;  %v407_v12 = vpop.f32.mrb[2].mxu0 }
 0x19f   : > { %v411_v13 = vpack.c.bf16 %v407_v12, %v404_v8  ;;  %v466_v14 = vpop.f32.mrb[2].mxu1  ;;  %v1820_v15 = vpop.f32.mrb[3].mxu0 }
 0x1a0   : > { %v470_v16 = vpack.c.bf16 %v466_v14, %v463_v9  ;;  %v1828_v17 = vpop.f32.mrb[3].mxu1 }
 0x1a1   : > { %412 = vst.msk [vmem:[#allocation2] sm:$0xff] %vm366_vm1, %v411_v13 }
 0x1a2   : > { %471 = vst.msk [vmem:[#allocation3] sm:$0xff] %vm366_vm1, %v470_v16 }
 0x1a3 PF: > { %v2110_v18 = vld [vmem:[#allocation8] sm:$0xff]   ;;  %s3041_s10 = sld [smem:[#allocation20_spill]]  ;;  %v2431_v19 = vmov 0.0   ;;  %v2111_v20 = vld [vmem:[#allocation8 + $0x8] sm:$0xff]   ;;  %vm2432_vm2 = vmmov 0   ;;  %vm539_vm3 = vcmask 31744  }
 0x1a4   : > { %1829 = vmatprep.subr.bf16.mxu0 %v2431_v19  ;;  %1837 = vmatprep.subr.bf16.mxu1 %v2431_v19  ;;  %s2433_s24 = smov 124   ;;  %s2434_s16 = smov 120   ;;  %vm492_vm4 = vcmask 261120   ;;  %vm586_vm5 = vcmask 130048   ;;  %vm643_vm6 = vcmask 27648   ;;  %vm765_vm7 = vcmask 60448  }
 0x1a5   : > { %1830 = vmatpush3.bf16.msra.mxu0 %v2110_v18  ;;  %1833 = vmatprep.mubr.msk.bf16.mxu0 %vm2432_vm2, %v2431_v19  ;;  %s2435_s5 = smov 116   ;;  %s2436_s19 = smov 112   ;;  %vm886_vm8 = vcmask 93248   ;;  %vm1007_vm9 = vcmask 126048   ;;  %vm1128_vm10 = vcmask 158848   ;;  %vm1249_vm11 = vcmask 191648  }
 0x1a6   : > { %1831 = vmatprep.subr.bf16.mxu0 %v2431_v19  ;;  %1839 = vmatprep.mubr.msk.bf16.mxu1 %vm2432_vm2, %v2431_v19  ;;  %s2437_s6 = smov 108   ;;  %s2438_s13 = smov 104   ;;  %vm1370_vm12 = vcmask 224448   ;;  %vm1491_vm13 = vcmask 257248  }
 0x1a7   : > { %s2439_s8 = smov 100   ;;  %s2440_s28 = smov 4  }
 0x1a8   : > { %v645_v21 = vld [vmem:[#allocation2] sm:$0xff]  ;;  %s2441_s21 = smov 8   ;;  %s2443_s12 = smov 16  }
 0x1a9   : > { %s1725_s27 = sshll.u32 %s3041_s10, 3  ;;  %651 = vrot.lane.b32.xlu0 %v645_v21, %s2433_s24  ;;  %v544_v22 = vsel %vm539_vm3, %v645_v21, 0  ;;  %772 = vrot.lane.b32.xlu1 %v645_v21, %s2434_s16  ;;  %v2804_v32 = vld [vmem:[#allocation3] sm:$0xff] }
 0x1aa   : > { %s473_s1 = scalar_lea.vmem %s2747_s9, %s1725_s27 [#allocation5]  ;;  %1838 = vmatpush3.bf16.xpose.msra.mxu1 %v544_v22  ;;  %1832 = vmatpush3.bf16.msra.mxu0 %v2111_v20  ;;  %s2442_s9 = smov 12  }
 0x1ab   : > { %v474_v23 = vld [vmem:[%s473_s1] sm:$0xff]  ;;  %1849 = vmatprep.subr.bf16.mxu1 %v2431_v19  ;;  %1843 = vmatprep.subr.bf16.mxu0 %v2431_v19  ;;  %s2444_s27 = smov 20   ;;  %s2445_s1 = smov 24  }
 0x1ac   : > { %v475_v24 = vpack.c.bf16 %v474_v23, %v474_v23 }
 0x1ae   : > { %1834 = vmatmul.mubr.msk.bf16.vlgmr.msra.gmra.mrb[0].mxu0 %vm492_vm4, %v475_v24 }
 0x1af   : > { %1845 = vmatprep.mubr.msk.bf16.mxu0 %vm2432_vm2, %v2431_v19  ;;  %1844 = vmatpush3.bf16.msra.mxu0 %v2804_v32 }
 0x1b0   : > { %1855 = vmatprep.subr.bf16.mxu0 %v2431_v19 }
 0x21b   : > { %v652_v25 = vpop.permute.xlu0 %651  ;;  %v773_v33 = vpop.permute.xlu1 %772 }
 0x21c   : > { %v657_v30 = vsel %vm539_vm3, %v652_v25, 0  ;;  %v778_v34 = vsel %vm539_vm3, %v773_v33, 0 }
 0x281   : > { %v530_v26 = vpop.f32.mrb[0].mxu0 }
 0x282   : > { %v536_v27 = vpack.c.bf16 %v530_v26, %v530_v26  ;;  %v1835_v28 = vpop.f32.mrb[1].mxu0 }
 0x283   : > { %v533_v29 = vpop.f32.mrb[2].mxu0 }
 0x284   : > { %769 = vrot.lane.b32.xlu1 %v536_v27, %s2434_s16  ;;  %648 = vrot.lane.b32.xlu0 %v536_v27, %s2433_s24  ;;  %v1836_v31 = vpop.f32.mrb[3].mxu0 }
 0x285   : > { %1840 = vmatmul.mubr.msk.bf16.vlgmr.msra.gmra.mrb[0].mxu1 %vm539_vm3, %v536_v27 }
 0x286   : > { %1850 = vmatpush3.bf16.xpose.msra.mxu1 %v657_v30  ;;  %1851 = vmatprep.mubr.msk.bf16.mxu1 %vm2432_vm2, %v2431_v19 }
 0x287   : > { %1861 = vmatprep.subr.bf16.mxu1 %v2431_v19 }
 0x288   : > { %890 = vrot.lane.b32.xlu1 %v536_v27, %s2435_s5  ;;  %893 = vrot.lane.b32.xlu0 %v645_v21, %s2435_s5 }
 0x28c   : > { %1011 = vrot.lane.b32.xlu1 %v536_v27, %s2436_s19  ;;  %1014 = vrot.lane.b32.xlu0 %v645_v21, %s2436_s19 }
 0x290   : > { %1132 = vrot.lane.b32.xlu1 %v536_v27, %s2437_s6  ;;  %1135 = vrot.lane.b32.xlu0 %v645_v21, %s2437_s6 }
 0x294   : > { %1253 = vrot.lane.b32.xlu1 %v536_v27, %s2438_s13  ;;  %1256 = vrot.lane.b32.xlu0 %v645_v21, %s2438_s13 }
 0x298   : > { %1374 = vrot.lane.b32.xlu1 %v536_v27, %s2439_s8  ;;  %1377 = vrot.lane.b32.xlu0 %v645_v21, %s2439_s8 }
 0x29c   : > { %710 = vrot.lane.b32.xlu0 %v2804_v32, %s2433_s24  ;;  %831 = vrot.lane.b32.xlu1 %v2804_v32, %s2434_s16  ;;  %s2446_s24 = smov 28   ;;  %s3042_s16 = sld [smem:[#allocation21_spill]] }
 0x2f6   : > { %v649_v35 = vpop.permute.xlu0 %648  ;;  %v770_v38 = vpop.permute.xlu1 %769 }
 0x2f7   : > { %1852 = vmatmul.mubr.msk.bf16.vlgmr.msra.gmra.mrb[4].mxu1 %vm539_vm3, %v649_v35 }
 0x2f8   : > { %1862 = vmatpush3.bf16.xpose.msra.mxu1 %v778_v34  ;;  %1863 = vmatprep.mubr.msk.bf16.mxu1 %vm2432_vm2, %v2431_v19 }
 0x2f9   : > { %1873 = vmatprep.subr.bf16.mxu1 %v2431_v19 }
 0x2fa   : > { %v894_v36 = vpop.permute.xlu0 %893  ;;  %v891_v41 = vpop.permute.xlu1 %890 }
 0x2fb   : > { %v899_v37 = vsel %vm539_vm3, %v894_v36, 0 }
 0x2fe   : > { %v1015_v39 = vpop.permute.xlu0 %1014  ;;  %v1012_v44 = vpop.permute.xlu1 %1011 }
 0x2ff   : > { %1864 = vmatmul.mubr.msk.bf16.vlgmr.msra.gmra.mrb[8].mxu1 %vm539_vm3, %v770_v38  ;;  %v1020_v40 = vsel %vm539_vm3, %v1015_v39, 0 }
 0x300   : > { %1874 = vmatpush3.bf16.xpose.msra.mxu1 %v899_v37  ;;  %1875 = vmatprep.mubr.msk.bf16.mxu1 %vm2432_vm2, %v2431_v19 }
 0x301   : > { %1885 = vmatprep.subr.bf16.mxu1 %v2431_v19 }
 0x302   : > { %v1136_v42 = vpop.permute.xlu0 %1135  ;;  %v1133_v47 = vpop.permute.xlu1 %1132 }
 0x303   : > { %v1141_v43 = vsel %vm539_vm3, %v1136_v42, 0 }
 0x306   : > { %v1257_v45 = vpop.permute.xlu0 %1256  ;;  %v1254_v50 = vpop.permute.xlu1 %1253 }
 0x307   : > { %1876 = vmatmul.mubr.msk.bf16.vlgmr.msra.gmra.mrb[12].mxu1 %vm539_vm3, %v891_v41  ;;  %v1262_v46 = vsel %vm539_vm3, %v1257_v45, 0 }
 0x308   : > { %1886 = vmatpush3.bf16.xpose.msra.mxu1 %v1020_v40  ;;  %1887 = vmatprep.mubr.msk.bf16.mxu1 %vm2432_vm2, %v2431_v19 }
 0x309   : > { %1897 = vmatprep.subr.bf16.mxu1 %v2431_v19 }
 0x30a   : > { %v1378_v48 = vpop.permute.xlu0 %1377  ;;  %v1375_v51 = vpop.permute.xlu1 %1374 }
 0x30b   : > { %v1383_v49 = vsel %vm539_vm3, %v1378_v48, 0 }
 0x30e   : > { %v711_v8 = vpop.permute.xlu0 %710  ;;  %v832_v36 = vpop.permute.xlu1 %831 }
 0x30f   : > { %1888 = vmatmul.mubr.msk.bf16.vlgmr.msra.gmra.mrb[16].mxu1 %vm539_vm3, %v1012_v44 }
 0x310   : > { %1898 = vmatpush3.bf16.xpose.msra.mxu1 %v1141_v43  ;;  %1899 = vmatprep.mubr.msk.bf16.mxu1 %vm2432_vm2, %v2431_v19 }
 0x311   : > { %1909 = vmatprep.subr.bf16.mxu1 %v2431_v19 }
 0x317   : > { %1900 = vmatmul.mubr.msk.bf16.vlgmr.msra.gmra.mrb[20].mxu1 %vm539_vm3, %v1133_v47 }
 0x318   : > { %1910 = vmatpush3.bf16.xpose.msra.mxu1 %v1262_v46  ;;  %1911 = vmatprep.mubr.msk.bf16.mxu1 %vm2432_vm2, %v2431_v19 }
 0x319   : > { %1921 = vmatprep.subr.bf16.mxu1 %v2431_v19 }
 0x31f   : > { %1912 = vmatmul.mubr.msk.bf16.vlgmr.msra.gmra.mrb[24].mxu1 %vm539_vm3, %v1254_v50 }
 0x320   : > { %1922 = vmatpush3.bf16.xpose.msra.mxu1 %v1383_v49  ;;  %1923 = vmatprep.mubr.msk.bf16.mxu1 %vm2432_vm2, %v2431_v19 }
 0x321   : > { %1933 = vmatprep.subr.bf16.mxu1 %v2431_v19 }
 0x327   : > { %1924 = vmatmul.mubr.msk.bf16.vlgmr.msra.gmra.mrb[28].mxu1 %vm539_vm3, %v1375_v51 }
 0x328   : > { %1937 = vmatprep.mubr.msk.bf16.mxu1 %vm2432_vm2, %v2431_v19 }
 0x358   : > { %v580_v52 = vpop.f32.mrb[0].mxu1 }
 0x359   : > { %v1841_v53 = vpop.f32.mrb[1].mxu1  ;;  %v587_v54 = vsel %vm586_vm5, %v580_v52, -inf }
 0x35a   : > { %588 = vmax.xlane.f32.xlu0 %v587_v54  ;;  %v583_v55 = vpop.f32.mrb[2].mxu1 }
 0x35b   : > { %v1842_v56 = vpop.f32.mrb[3].mxu1 }
 0x3ca   : > { %v693_v57 = vpop.f32.mrb[4].mxu1 }
 0x3cb   : > { %v1853_v58 = vpop.f32.mrb[5].mxu1  ;;  %v699_v59 = vsel %vm586_vm5, %v693_v57, -inf }
 0x3cc   : > { %700 = vmax.xlane.f32.xlu1 %v699_v59  ;;  %v696_v60 = vpop.f32.mrb[6].mxu1 }
 0x3cd   : > { %v1854_v61 = vpop.f32.mrb[7].mxu1 }
 0x3d2   : > { %v814_v62 = vpop.f32.mrb[8].mxu1 }
 0x3d3   : > { %v1865_v63 = vpop.f32.mrb[9].mxu1  ;;  %v820_v0 = vsel %vm586_vm5, %v814_v62, -inf }
 0x3d4   : > { %821 = vmax.xlane.f32.xlu0 %v820_v0  ;;  %v817_v1 = vpop.f32.mrb[10].mxu1 }
 0x3d5   : > { %v1866_v2 = vpop.f32.mrb[11].mxu1 }
 0x3da   : > { %v935_v3 = vpop.f32.mrb[12].mxu1 }
 0x3db   : > { %v1877_v4 = vpop.f32.mrb[13].mxu1  ;;  %v941_v5 = vsel %vm586_vm5, %v935_v3, -inf }
 0x3dc   : > { %942 = vmax.xlane.f32.xlu0 %v941_v5  ;;  %v938_v6 = vpop.f32.mrb[14].mxu1 }
 0x3dd   : > { %952 = vrot.lane.b32.xlu1 %v2804_v32, %s2435_s5  ;;  %v1878_v7 = vpop.f32.mrb[15].mxu1  ;;  %s1757_s5 = sshll.u32 %s3042_s16, 1 }
 0x3e2   : > { %v2851_v9 = vpop.f32.mrb[16].mxu1 }
 0x3e3   : > { %v1889_v10 = vpop.f32.mrb[17].mxu1  ;;  %v1062_v31 = vsel %vm586_vm5, %v2851_v9, -inf }
 0x3e4   : > { %v1059_v11 = vpop.f32.mrb[18].mxu1 }
 0x3e5   : > { %v1890_v12 = vpop.f32.mrb[19].mxu1 }
 0x3e7   : > { %v589_v13 = vpop.xlane.xlu0 %588 }
 0x3e8   : > { %v590_v14 = vsub.f32 %v580_v52, %v589_v13 }
 0x3ea   : > { %v591_v15 = vmul.f32 1.442695, %v590_v14  ;;  %v2853_v16 = vpop.f32.mrb[20].mxu1 }
 0x3eb   : > { %v1901_v17 = vpop.f32.mrb[21].mxu1  ;;  %v1183_v33 = vsel %vm586_vm5, %v2853_v16, -inf }
 0x3ec   : > { %2114 = vpow2.f32 %v591_v15  ;;  %v1180_v18 = vpop.f32.mrb[22].mxu1 }
 0x3ed   : > { %v1902_v20 = vpop.f32.mrb[23].mxu1 }
 0x3f2   : > { %1073 = vrot.lane.b32.xlu0 %v2804_v32, %s2436_s19  ;;  %v2857_v21 = vpop.f32.mrb[24].mxu1  ;;  %s3043_s19 = sld [smem:[#allocation22_spill]] }
 0x3f3   : > { %v1913_v22 = vpop.f32.mrb[25].mxu1  ;;  %v1304_v35 = vsel %vm586_vm5, %v2857_v21, -inf }
 0x3f4   : > { %v1301_v23 = vpop.f32.mrb[26].mxu1 }
 0x3f5   : > { %v1914_v24 = vpop.f32.mrb[27].mxu1 }
 0x3f6   : > { %v2859_v25 = vpop.eup %2114 }
 0x3f7   : > { %v596_v26 = vpack.c.bf16 %v2859_v25, %v2859_v25  ;;  %v593_v18 = vsel %vm586_vm5, %v2859_v25, 0.0 }
 0x3f8   : > { %p3046_p6 = scmp.ne.s32.totalorder %s3043_s19, 0 }
 0x3f9   : > { %1846 = vmatmul.mubr.msk.bf16.vlgmr.msra.gmra.mrb[4].mxu0 %vm586_vm5, %v596_v26 }
 0x3fa   : > { %v2864_v27 = vpop.f32.mrb[28].mxu1  ;;  %1856 = vmatpush3.bf16.msra.mxu0 %v711_v8  ;;  %1857 = vmatprep.mubr.msk.bf16.mxu0 %vm2432_vm2, %v2431_v19 }
 0x3fb   : > { %v1925_v28 = vpop.f32.mrb[29].mxu1  ;;  %1867 = vmatprep.subr.bf16.mxu0 %v2431_v19  ;;  %v1425_v34 = vsel %vm586_vm5, %v2864_v27, -inf }
 0x3fc   : > { %v1422_v29 = vpop.f32.mrb[30].mxu1 }
 0x3fd   : > { %v1926_v30 = vpop.f32.mrb[31].mxu1 }
 0x401   : > { %1063 = vmax.xlane.f32.xlu1 %v1062_v31 }
 0x405   : > { %1184 = vmax.xlane.f32.xlu1 %v1183_v33 }
 0x409   : > { %1426 = vmax.xlane.f32.xlu1 %v1425_v34 }
 0x411   : > { %1305 = vmax.xlane.f32.xlu0 %v1304_v35 }
 0x41a   : > { %1194 = vrot.lane.b32.xlu1 %v2804_v32, %s2437_s6  ;;  %s1573_s6 = sadd.s32 %s3041_s10, %s1757_s5  ;;  %s1562_s10 = scalar_lea.sflag [#allocation7], %s339_s2 }
 0x41b   : > { %s2447_s5 = smov [#allocation14]  }
 0x427   : > { %1315 = vrot.lane.b32.xlu0 %v2804_v32, %s2438_s13 }
 0x42b   : > { %1436 = vrot.lane.b32.xlu0 %v2804_v32, %s2439_s8 }
 0x459   : > { %v701_v37 = vpop.xlane.xlu1 %700 }
 0x45a   : > { %v702_v38 = vsub.f32 %v693_v57, %v701_v37 }
 0x45c   : > { %v703_v39 = vmul.f32 1.442695, %v702_v38 }
 0x45d   : > { %v953_v51 = vpop.permute.xlu1 %952 }
 0x45e   : > { %2116 = vpow2.f32 %v703_v39 }
 0x461   : > { %v822_v40 = vpop.xlane.xlu0 %821 }
 0x462   : > { %v823_v41 = vsub.f32 %v814_v62, %v822_v40 }
 0x464   : > { %v824_v42 = vmul.f32 1.442695, %v823_v41 }
 0x466   : > { %2118 = vpow2.f32 %v824_v42 }
 0x468   : > { %v2117_v43 = vpop.eup %2116 }
 0x469   : > { %v943_v44 = vpop.xlane.xlu0 %942  ;;  %v705_v45 = vsel %vm586_vm5, %v2117_v43, 0.0  ;;  %v708_v46 = vpack.c.bf16 %v2117_v43, %v2117_v43 }
 0x46a   : > { %v944_v47 = vsub.f32 %v935_v3, %v943_v44  ;;  %706 = vadd.xlane.f32.xlu1 %v705_v45 }
 0x46b   : > { %1858 = vmatmul.mubr.msk.bf16.vlgmr.msra.gmra.mrb[8].mxu0 %vm586_vm5, %v708_v46 }
 0x46c   : > { %v945_v48 = vmul.f32 1.442695, %v944_v47  ;;  %1868 = vmatpush3.bf16.msra.mxu0 %v832_v36  ;;  %1869 = vmatprep.mubr.msk.bf16.mxu0 %vm2432_vm2, %v2431_v19 }
 0x46d   : > { %1879 = vmatprep.subr.bf16.mxu0 %v2431_v19  ;;  %v1074_v55 = vpop.permute.xlu0 %1073 }
 0x46e   : > { %2120 = vpow2.f32 %v945_v48 }
 0x470   : > { %v2119_v32 = vpop.eup %2118 }
 0x471   : > { %v826_v49 = vsel %vm586_vm5, %v2119_v32, 0.0  ;;  %v829_v50 = vpack.c.bf16 %v2119_v32, %v2119_v32 }
 0x472   : > { %827 = vadd.xlane.f32.xlu0 %v826_v49 }
 0x473   : > { %1870 = vmatmul.mubr.msk.bf16.vlgmr.msra.gmra.mrb[12].mxu0 %vm586_vm5, %v829_v50 }
 0x474   : > { %1880 = vmatpush3.bf16.msra.mxu0 %v953_v51  ;;  %1881 = vmatprep.mubr.msk.bf16.mxu0 %vm2432_vm2, %v2431_v19 }
 0x475   : > { %1891 = vmatprep.subr.bf16.mxu0 %v2431_v19 }
 0x478   : > { %v2121_v52 = vpop.eup %2120 }
 0x479   : > { %v947_v53 = vsel %vm586_vm5, %v2121_v52, 0.0  ;;  %v950_v54 = vpack.c.bf16 %v2121_v52, %v2121_v52 }
 0x47a   : > { %948 = vadd.xlane.f32.xlu0 %v947_v53 }
 0x47b   : > { %1882 = vmatmul.mubr.msk.bf16.vlgmr.msra.gmra.mrb[16].mxu0 %vm586_vm5, %v950_v54 }
 0x47c   : > { %1892 = vmatpush3.bf16.msra.mxu0 %v1074_v55  ;;  %1893 = vmatprep.mubr.msk.bf16.mxu0 %vm2432_vm2, %v2431_v19 }
 0x47d   : > { %1903 = vmatprep.subr.bf16.mxu0 %v2431_v19 }
 0x48e   : > { %v1064_v56 = vpop.xlane.xlu1 %1063 }
 0x48f   : > { %v1065_v57 = vsub.f32 %v2851_v9, %v1064_v56 }
 0x491   : > { %v1066_v58 = vmul.f32 1.442695, %v1065_v57 }
 0x492   : > { %v1185_v59 = vpop.xlane.xlu1 %1184 }
 0x493   : > { %2122 = vpow2.f32 %v1066_v58  ;;  %v1186_v60 = vsub.f32 %v2853_v16, %v1185_v59 }
 0x495   : > { %v1187_v61 = vmul.f32 1.442695, %v1186_v60 }
 0x496   : > { %v1427_v62 = vpop.xlane.xlu1 %1426 }
 0x497   : > { %2124 = vpow2.f32 %v1187_v61  ;;  %v1428_v63 = vsub.f32 %v2864_v27, %v1427_v62 }
 0x499   : > { %v1429_v0 = vmul.f32 1.442695, %v1428_v63 }
 0x49a   : > { %v1195_v4 = vpop.permute.xlu1 %1194 }
 0x49b   : > { %2126 = vpow2.f32 %v1429_v0 }
 0x49d   : > { %v2123_v1 = vpop.eup %2122 }
 0x49e   : > { %v1306_v2 = vpop.xlane.xlu0 %1305  ;;  %v1068_v3 = vsel %vm586_vm5, %v2123_v1, 0.0  ;;  %v1071_v5 = vpack.c.bf16 %v2123_v1, %v2123_v1 }
 0x49f   : > { %v1307_v6 = vsub.f32 %v2857_v21, %v1306_v2  ;;  %1069 = vadd.xlane.f32.xlu1 %v1068_v3 }
 0x4a0   : > { %1894 = vmatmul.mubr.msk.bf16.vlgmr.msra.gmra.mrb[20].mxu0 %vm586_vm5, %v1071_v5 }
 0x4a1   : > { %v2125_v7 = vpop.eup %2124  ;;  %v1308_v8 = vmul.f32 1.442695, %v1307_v6  ;;  %1904 = vmatpush3.bf16.msra.mxu0 %v1195_v4  ;;  %1905 = vmatprep.mubr.msk.bf16.mxu0 %vm2432_vm2, %v2431_v19 }
 0x4a2   : > { %v1189_v9 = vsel %vm586_vm5, %v2125_v7, 0.0  ;;  %1915 = vmatprep.subr.bf16.mxu0 %v2431_v19  ;;  %v1316_v11 = vpop.permute.xlu0 %1315  ;;  %v1192_v13 = vpack.c.bf16 %v2125_v7, %v2125_v7 }
 0x4a3   : > { %2128 = vpow2.f32 %v1308_v8  ;;  %1190 = vadd.xlane.f32.xlu0 %v1189_v9  ;;  %v2112_v9 = vld [vmem:[#allocation13] sm:$0xff]  }
 0x4a4   : > { %1934 = vmatpush3.bf16.msra.mxu1 %v2112_v9 }
 0x4a5   : > { %v2127_v10 = vpop.eup %2126  ;;  %1935 = vmatprep.subr.bf16.mxu1 %v2431_v19 }
 0x4a6   : > { %v1431_v12 = vsel %vm586_vm5, %v2127_v10, 0.0  ;;  %v1437_v15 = vpop.permute.xlu0 %1436  ;;  %v1434_v20 = vpack.c.bf16 %v2127_v10, %v2127_v10 }
 0x4a7   : > { %1432 = vadd.xlane.f32.xlu0 %v1431_v12 }
 0x4a8   : > { %1906 = vmatmul.mubr.msk.bf16.vlgmr.msra.gmra.mrb[24].mxu0 %vm586_vm5, %v1192_v13  ;;  %v2113_v13 = vld [vmem:[#allocation13 + $0x8] sm:$0xff]  }
 0x4a9   : > { %1916 = vmatpush3.bf16.msra.mxu0 %v1316_v11  ;;  %1917 = vmatprep.mubr.msk.bf16.mxu0 %vm2432_vm2, %v2431_v19 }
 0x4aa   : > { %1927 = vmatprep.subr.bf16.mxu0 %v2431_v19  ;;  %1936 = vmatpush3.bf16.msra.mxu1 %v2113_v13 }
 0x4ad   : > { %v2129_v14 = vpop.eup %2128 }
 0x4ae   : > { %v1310_v16 = vsel %vm586_vm5, %v2129_v14, 0.0  ;;  %v1313_v17 = vpack.c.bf16 %v2129_v14, %v2129_v14 }
 0x4af   : > { %1311 = vadd.xlane.f32.xlu1 %v1310_v16 }
 0x4b0   : > { %1918 = vmatmul.mubr.msk.bf16.vlgmr.msra.gmra.mrb[28].mxu0 %vm586_vm5, %v1313_v17 }
 0x4b1   : > { %1928 = vmatpush3.bf16.msra.mxu0 %v1437_v15  ;;  %1929 = vmatprep.mubr.msk.bf16.mxu0 %vm2432_vm2, %v2431_v19 }
 0x4b3   : > { %594 = vadd.xlane.f32.xlu1 %v593_v18 }
 0x4b8   : > { %1930 = vmatmul.mubr.msk.bf16.vlgmr.msra.gmra.mrb[32].mxu0 %vm586_vm5, %v1434_v20 }
 0x4cc   : > { %v634_v21 = vpop.f32.mrb[4].mxu0 }
 0x4cd   : > { %v1847_v22 = vpop.f32.mrb[5].mxu0 }
 0x4ce   : > { %v637_v23 = vpop.f32.mrb[6].mxu0 }
 0x4cf   : > { %v1848_v24 = vpop.f32.mrb[7].mxu0 }
 0x4f7   : > { %v707_v26 = vpop.xlane.xlu1 %706 }
 0x4f8   : > { %2130 = vrcp.f32 %v707_v26 }
 0x4ff   : > { %v828_v28 = vpop.xlane.xlu0 %827 }
 0x500   : > { %2132 = vrcp.f32 %v828_v28 }
 0x502   : > { %v2131_v30 = vpop.eup %2130 }
 0x507   : > { %v949_v36 = vpop.xlane.xlu0 %948 }
 0x50a   : > { %v2133_v39 = vpop.eup %2132 }
 0x52c   : > { %v1070_v27 = vpop.xlane.xlu1 %1069 }
 0x530   : > { %v1191_v55 = vpop.xlane.xlu0 %1190 }
 0x534   : > { %v1433_v4 = vpop.xlane.xlu0 %1432 }
 0x53c   : > { %v1312_v29 = vpop.xlane.xlu1 %1311 }
 0x53e   : > { %v750_v31 = vpop.f32.mrb[8].mxu0 }
 0x53f   : > { %v757_v33 = vmul.f32 %v2131_v30, %v750_v31  ;;  %v1859_v34 = vpop.f32.mrb[9].mxu0 }
 0x540   : > { %v595_v35 = vpop.xlane.xlu1 %594  ;;  %v753_v25 = vpop.f32.mrb[10].mxu0 }
 0x541   : > { %v1762_v37 = vpack.c.bf16 %v757_v33, %v757_v33  ;;  %2134 = vrcp.f32 %v595_v35  ;;  %v1860_v38 = vpop.f32.mrb[11].mxu0 }
 0x542   : > { %2136 = vrcp.f32 %v949_v36 }
 0x543   : > { %762 = vrot.lane.b32.xlu0 %v1762_v37, %s2440_s28  ;;  %2138 = vrcp.f32 %v1070_v27  ;;  %s3044_s28 = sld [smem:[#allocation26_spill]] }
 0x544   : > { %2140 = vrcp.f32 %v1191_v55 }
 0x545   : > { %2142 = vrcp.f32 %v1312_v29 }
 0x546   : > { %v871_v40 = vpop.f32.mrb[12].mxu0  ;;  %2144 = vrcp.f32 %v1433_v4 }
 0x547   : > { %v878_v41 = vmul.f32 %v2133_v39, %v871_v40  ;;  %v1871_v42 = vpop.f32.mrb[13].mxu0 }
 0x548   : > { %v874_v43 = vpop.f32.mrb[14].mxu0 }
 0x549   : > { %v1763_v44 = vpack.c.bf16 %v878_v41, %v878_v41  ;;  %v1872_v45 = vpop.f32.mrb[15].mxu0  ;;  %v1752_v33 = vld [vmem:[%s3044_s28] ss:$0 sm:$0xff] }
 0x54b   : > { %v2135_v46 = vpop.eup %2134  ;;  %883 = vrot.lane.b32.xlu1 %v1763_v44, %s2441_s21  ;;  %s1758_s21 = sshll.u32 %s1573_s6, 7  ;;  %s2292_s6 = sshll.u32 %s2447_s5, 4  ;;  %s2293_s6 = int_to_ptr.vmem [resolvable:$false] %s2292_s6 }
 0x54c   : > { %v641_v47 = vmul.f32 %v2135_v46, %v634_v21  ;;  %v2137_v48 = vpop.eup %2136  ;;  %s2294_s13 = scalar_lea.vmem %s2293_s6, 256 }
 0x54d   : > { %v2139_v56 = vpop.eup %2138 }
 0x54e   : > { %v992_v32 = vpop.f32.mrb[16].mxu0  ;;  %v642_v49 = vpack.c.bf16 %v641_v47, %v641_v47  ;;  %v2141_v63 = vpop.eup %2140 }
 0x54f   : > { %v999_v50 = vmul.f32 %v2137_v48, %v992_v32  ;;  %v1883_v51 = vpop.f32.mrb[17].mxu0  ;;  %v2143_v7 = vpop.eup %2142 }
 0x550   : > { %v995_v52 = vpop.f32.mrb[18].mxu0  ;;  %644 = vst.msk [vmem:[#allocation4] sm:$0xf] %vm643_vm6, %v642_v49  ;;  %v2145_v16 = vpop.eup %2144 }
 0x551   : > { %v1764_v53 = vpack.c.bf16 %v999_v50, %v999_v50  ;;  %v1884_v54 = vpop.f32.mrb[19].mxu0 }
 0x553   : > { %1004 = vrot.lane.b32.xlu1 %v1764_v53, %s2442_s9  ;;  %s1577_s9 = sshll.u32 %s341_s11, 4  ;;  %s2934_s9 = int_to_ptr.vmem [resolvable:$true] %s1577_s9 }
 0x554   : > { %s2288_s16 = scalar_lea.vmem %s2934_s9, 128  ;;  %p2295_p11 = scmp.lt.s32.totalorder %s2934_s9, %s2293_s6 }
 0x555   : > { %p2289_p4 = scmp.ne.s32.totalorder %s2934_s9, %s2288_s16  ;;  %p2296_p0 = scmp.lt.s32.totalorder %s2294_s13, %s2288_s16 }
 0x557   : > { %p2290_p10 = pnand %p2289_p4, %p3046_p6  ;;  %p2297_p5 = por %p2296_p0, %p2295_p11 }
 0x559   : > { %p2291_p13 = pneg %p2290_p10 }
 0x55b   : > { %p2298_p8 = pnand %p2297_p5, %p2291_p13 }
 0x573   : > { %v1113_v57 = vpop.f32.mrb[20].mxu0 }
 0x574   : > { %v1120_v58 = vmul.f32 %v2139_v56, %v1113_v57  ;;  %v1895_v59 = vpop.f32.mrb[21].mxu0 }
 0x575   : > { %v1116_v60 = vpop.f32.mrb[22].mxu0 }
 0x576   : > { %v1765_v61 = vpack.c.bf16 %v1120_v58, %v1120_v58  ;;  %v1896_v62 = vpop.f32.mrb[23].mxu0 }
 0x578   : > { %1125 = vrot.lane.b32.xlu0 %v1765_v61, %s2443_s12 }
 0x57b   : > { %v1234_v0 = vpop.f32.mrb[24].mxu0 }
 0x57c   : > { %v1241_v1 = vmul.f32 %v2141_v63, %v1234_v0  ;;  %v1907_v2 = vpop.f32.mrb[25].mxu0 }
 0x57d   : > { %v1237_v3 = vpop.f32.mrb[26].mxu0 }
 0x57e   : > { %v1766_v5 = vpack.c.bf16 %v1241_v1, %v1241_v1  ;;  %v1908_v6 = vpop.f32.mrb[27].mxu0 }
 0x580   : > { %1246 = vrot.lane.b32.xlu1 %v1766_v5, %s2444_s27 }
 0x583   : > { %v1355_v8 = vpop.f32.mrb[28].mxu0 }
 0x584   : > { %v1362_v10 = vmul.f32 %v2143_v7, %v1355_v8  ;;  %v1919_v11 = vpop.f32.mrb[29].mxu0 }
 0x585   : > { %v1358_v12 = vpop.f32.mrb[30].mxu0 }
 0x586   : > { %v1767_v14 = vpack.c.bf16 %v1362_v10, %v1362_v10  ;;  %v1920_v15 = vpop.f32.mrb[31].mxu0 }
 0x588   : > { %1367 = vrot.lane.b32.xlu0 %v1767_v14, %s2445_s1  ;;  %s3045_s1 = sld [smem:[#allocation27_spill]] }
 0x58b   : > { %v1476_v17 = vpop.f32.mrb[32].mxu0 }
 0x58c   : > { %v1483_v18 = vmul.f32 %v2145_v16, %v1476_v17  ;;  %v1931_v20 = vpop.f32.mrb[33].mxu0 }
 0x58d   : > { %v1479_v21 = vpop.f32.mrb[34].mxu0 }
 0x58e   : > { %v1768_v22 = vpack.c.bf16 %v1483_v18, %v1483_v18  ;;  %v1932_v23 = vpop.f32.mrb[35].mxu0 }
 0x590   : > { %1488 = vrot.lane.b32.xlu1 %v1768_v22, %s2446_s24  ;;  %s2932_s24 = scalar_lea.hbm %s3045_s1, %s1758_s21 }
 0x5b5   : > { %v763_v24 = vpop.permute.xlu0 %762 }
 0x5b6   : > { %766 = vst.msk [vmem:[#allocation4] sm:$0xf] %vm765_vm7, %v763_v24 }
 0x5bd   : > { %v884_v26 = vpop.permute.xlu1 %883 }
 0x5be   : > { %887 = vst.msk [vmem:[#allocation4] sm:$0xf] %vm886_vm8, %v884_v26 }
 0x5c5   : > { %v1005_v19 = vpop.permute.xlu1 %1004 }
 0x5c6   : > { %1008 = vst.msk [vmem:[#allocation4] sm:$0xf] %vm1007_vm9, %v1005_v19 }
 0x5ea   : > { %v1126_v27 = vpop.permute.xlu0 %1125 }
 0x5eb   : > { %1129 = vst.msk [vmem:[#allocation4] sm:$0xf] %vm1128_vm10, %v1126_v27 }
 0x5f2   : > { %v1247_v28 = vpop.permute.xlu1 %1246 }
 0x5f3   : > { %1250 = vst.msk [vmem:[#allocation4] sm:$0xf] %vm1249_vm11, %v1247_v28 }
 0x5fa   : > { %v1368_v29 = vpop.permute.xlu0 %1367 }
 0x5fb   : > { %1371 = vst.msk [vmem:[#allocation4] sm:$0xf] %vm1370_vm12, %v1368_v29 }
 0x602   : > { %v1489_v30 = vpop.permute.xlu1 %1488 }
 0x603   : > { %1492 = vst.msk [vmem:[#allocation4] sm:$0xf] %vm1491_vm13, %v1489_v30 }
 0x60a   : > { %v1493_v31 = vld [vmem:[#allocation4] sm:$0xf] }
 0x60b   : > { %1938 = vmatmul.mubr.msk.bf16.vlgmr.msra.gmra.mrb[32].mxu1 %vm492_vm4, %v1493_v31 }
 0x6de   : > { %v1554_v34 = vpop.f32.mrb[32].mxu1 }
 0x6df   : > { %v1555_v35 = vadd.f32 %v1752_v33, %v1554_v34  ;;  %v1939_v25 = vpop.f32.mrb[33].mxu1 }
 0x6e0   : > { %v1557_v36 = vpop.f32.mrb[34].mxu1 }
 0x6e1   : > { %1560 = vst.msk [vmem:[%s341_s11] sm:$0xff] %vm492_vm4, %v1555_v35  ;;  %v1940_v37 = vpop.f32.mrb[35].mxu1 }
 0x6e2   : > { %2301 = shalt.err (!%p2298_p8)
}
 0x6e3   : > { %s2302_s2 = scalar_lea.hbm %s2932_s24, 128  ;;  %s2306_s8 = scalar_lea.hbm %s3045_s1, 512 }
 0x6e4   : > { %p2303_p12 = scmp.ne.s32.totalorder %s2932_s24, %s2302_s2  ;;  %p2307_p9 = scmp.lt.u32.totalorder %s2932_s24, %s3045_s1 }
 0x6e5   : > { %p2308_p1 = scmp.lt.u32.totalorder %s2306_s8, %s2302_s2  ;;  %p2310_p4 = scmp.lt.u32.totalorder %s2302_s2, %s2932_s24 }
 0x6e6   : > { %p2304_p2 = pnand %p2303_p12, %p3046_p6 }
 0x6e7   : > { %p2309_p3 = por %p2308_p1, %p2307_p9 }
 0x6e8   : > { %p2305_p7 = pneg %p2304_p2 }
 0x6e9   : > { %p2311_p10 = por %p2310_p4, %p2309_p3 }
 0x6eb   : > { %p2312_p13 = pnand %p2311_p10, %p2305_p7 }
 0x6ed   : > { %2315 = shalt.err (!%p2312_p13)
}
 0x6ee   : > { %1959 = dma.vmem_to_hbm [thread:$0]  (%p3046_p6), %s2934_s9, 128, %s2932_s24, %s1562_s10  }
 0x6ef PF: > { %s3047_s12 = sld [smem:[#allocation19_spill]]  ;;  %s3048_s27 = sld [smem:[#allocation23_spill]] }
 0x6f0   : > { %p1991_p11 = scmp.ge.s32.totalorder %s2418_s7, 2 }
 0x6f5   : > { %s1589_s16 = sand.u32 1, %s3047_s12   ;;  %p3049_p0 = scmp.ne.s32.totalorder %s3048_s27, 0 }
 0x6f6   : > { %s1590_s5 = scalar_lea.sflag [#allocation7], %s1589_s16 }
 0x6f7   : > { %p1979_p5 = pnand %p1991_p11, %p3049_p0 }
 0x6f9   : > { %2373 = dma.done.wait (!%p1979_p5), %s1590_s5, 128  }
 0x6fa   : > { %2375 = vsyncadd (!%p1979_p5), %s1590_s5, 4294967168  ;;  %s24_s7 = sadd.s32 1, %s2418_s7   ;;  %s3050_s21 = smov %s2382_s22 }
 0x6fb   : > { %p21_p8 = scmp.ge.s32.totalorder %s24_s7, 6   ;;  %s3051_s22 = smov %s2386_s23 }
 0x6fc   : > { %s3052_s23 = smov %s2699_s20  ;;  %s3053_s24 = smov %s2394_s25 }
 0x6fd   : > { %s3054_s25 = smov %s2398_s26  ;;  %s3055_s26 = smov %s2696_s18 }
 0x6fe   : > { %s3056_s27 = smov %s2410_s29  ;;  %s3057_s28 = smov %s2414_s30 }
 0x6ff   : > { %s3058_s29 = smov %s3061_s17  ;;  %s3059_s30 = smov %s3065_s15 }
 0x700   :  { %23 = sbr.rel (!%p21_p8) target bundleno = 16 (0x10), region = 110 }
 0x707   :  { %1595 = vsyncpa [#allocation6], 1 }
 0x708   :  { %1597 = vsyncpa [#allocation6 + $0x1], 1 }
 0x709   :  { %1598 = vsyncpa [#allocation9], 1 }
 0x70a   :  { %1599 = vsyncpa [#allocation12], 1 }
 0x70b   :  { %1600 = vsyncpa [#allocation7], 1 }
 0x70c   :  { %1602 = vsyncpa [#allocation7 + $0x1], 1 }

</bundles_post_ra>
